<compile_context>
chip_gen: v6e
topology: v6e:2x2x1
jax: 0.10.0
libtpu: 0.0.40
codegen_flags: <defaults>
</compile_context>

<pallas_src>
import functools

import jax
import jax.numpy as jnp
from jax.experimental import pallas as pl
from jax.experimental.pallas import tpu as pltpu

_NUM_VEC_ROWS = 8  # bqkv, bo, g1, be1, b1, b2, g2, be2


# ----------------------------------------------------------------------------
# helpers
# ----------------------------------------------------------------------------
def _mm(a, w):
    # MXU matmul: operands in the (possibly bf16) weight dtype, f32 accumulate.
    return jnp.dot(a.astype(w.dtype), w, preferred_element_type=jnp.float32)


def _layernorm(x, g, b, eps=1e-5):
    mu = jnp.mean(x, axis=-1, keepdims=True)
    xc = x - mu
    var = jnp.mean(xc * xc, axis=-1, keepdims=True)
    # lax.rsqrt lowers to the EUP slot (keeps the LN inverse off the VPU).
    return xc * jax.lax.rsqrt(var + eps) * g + b


def _vmem_limit_bytes(default=32 * 1024 * 1024):
    # Derive the scoped-VMEM request from the chip instead of a fixed constant
    # (v7x only has 64 MiB physical VMEM per TensorCore).
    try:
        cap = int(pltpu.get_tpu_info().vmem_capacity_bytes)
        return int(min(cap // 2, 64 * 1024 * 1024))
    except Exception:
        return default


def _default_batch_chunks(n):
    # Split the batch over the "parallel" grid axis only on chips with two
    # TensorCores (v7x).  On v5e/v6e a second chunk just doubles sequential
    # grid steps and re-streams every layer's weights with zero gain.
    try:
        kind = jax.devices()[0].device_kind.lower()
    except Exception:
        kind = ""
    if "v7" in kind and n >= 2 and n % 2 == 0:
        return 2
    return 1


# ----------------------------------------------------------------------------
# Fused encoder kernel: embed (l == 0) + stack of TransformerBlocks.
# ----------------------------------------------------------------------------
def _encoder_kernel(x_ref, bias_ref, sw_ref, sb_ref, pos_ref,
                    wqkv_ref, wo_ref, w1_ref, w2_ref, vec_ref,
                    out_ref, *, heads, hidden, approx_recip):
    l = pl.program_id(1)
    cb, s, e = out_ref.shape
    d = e // heads
    cdt = wqkv_ref.dtype                       # matmul operand dtype (f32/bf16)

    # ---- fused input scaling (Linear F->E) + positional embedding ----------
    @pl.when(l == 0)
    def _():
        f = x_ref.shape[-1]
        x_in = x_ref[...].reshape(cb * s, f)
        emb = _mm(x_in, sw_ref[...]) + sb_ref[...]
        out_ref[...] = emb.reshape(cb, s, e) + pos_ref[...][None]

    # Activation stays resident in the out_ref VMEM block across the layer
    # axis (constant block index); HBM writeback happens once per batch chunk.
    x2 = out_ref[...].reshape(cb * s, e)                       # (CB*S, E) f32

    # ---- packed per-layer vectors (one DMA per layer step) -----------------
    vec = vec_ref[0]                                           # (8, MW) f32
    bqkv = vec[0:1, :3 * e]
    bo = vec[1:2, :e]
    g1 = vec[2:3, :e]
    be1 = vec[3:4, :e]
    b1 = vec[4:5, :hidden]
    b2 = vec[5:6, :e]
    g2 = vec[6:7, :e]
    be2 = vec[7:8, :e]

    # ---- multi-head self attention (value == key == query) -----------------
    # Fused QKV projection: ONE (CB*S, E) @ (E, 3E) MXU push.  The module's
    # 1/sqrt(embed_size) score scale is pre-folded into the Q weights/bias
    # host-side (NOT 1/sqrt(head_dim) - matches the reference).
    qkv = (_mm(x2, wqkv_ref[0]) + bqkv).astype(cdt)            # (CB*S, 3E)

    def heads_major(t2):
        # (CB*S, E) -> (CB*H, S, D): lane-slice per head, stack over a leading
        # axis (proven Mosaic relayout path; rank-4 transposes avoided).
        parts = [t2[:, h * d:(h + 1) * d].reshape(cb, s, d)
                 for h in range(heads)]
        return jnp.stack(parts, axis=1).reshape(cb * heads, s, d)

    qh = heads_major(qkv[:, :e])
    kh = heads_major(qkv[:, e:2 * e])
    vh = heads_major(qkv[:, 2 * e:])

    # Single batched contraction for ALL (batch-chunk, head) score tiles.
    scores = jnp.einsum('nqd,nkd->nqk', qh, kh,
                        preferred_element_type=jnp.float32)    # (CB*H, S, S)
    # Additive -1e20 mask bias, precomputed host-side, broadcast over heads.
    # Applied to the already-scaled scores (-1e20 still saturates the softmax).
    scores = scores.reshape(cb, heads, s, s) + bias_ref[...][:, None]
    scores = scores - jnp.max(scores, axis=-1, keepdims=True)
    p = jnp.exp(scores)
    denom = jnp.sum(p, axis=-1, keepdims=True)                 # (CB, H, S, 1)

    # Single batched PV contraction; normalize AFTER it (S*D elements instead
    # of S*S) with the EUP reciprocal.
    ctx = jnp.einsum('nqk,nkd->nqd',
                     p.reshape(cb * heads, s, s).astype(cdt), vh,
                     preferred_element_type=jnp.float32)       # (CB*H, S, D)
    ctx = ctx.reshape(cb, heads, s, d) * pl.reciprocal(denom,
                                                       approx=approx_recip)

    # Merge heads back onto the lane dim and apply fc_out as ONE matmul.
    merged = jnp.concatenate([ctx[:, h] for h in range(heads)], axis=-1)
    att = _mm(merged.reshape(cb * s, e), wo_ref[0]) + bo       # (CB*S, E)

    # ---- residual + norm1 + FFN + residual + norm2 (dropout p = 0) ----------
    x1 = _layernorm(att + x2, g1, be1)
    h1 = jnp.maximum(_mm(x1, w1_ref[0]) + b1, 0.0)
    ff = _mm(h1, w2_ref[0]) + b2
    y = _layernorm(ff + x1, g2, be2)

    out_ref[...] = y.reshape(cb, s, e)


# ----------------------------------------------------------------------------
# Host-side weight preparation (fusion / packing / optional bf16 cast)
# ----------------------------------------------------------------------------
def prepare_weights(params, *, compute_dtype=jnp.float32):
    lw = params["layers"]
    num_layers, e, _ = lw["wq"].shape
    hid = lw["w1"].shape[2]
    inv_scale = 1.0 / (float(e) ** 0.5)

    # Fused QKV with the module's 1/sqrt(embed_size) folded into Q.
    wqkv = jnp.concatenate([lw["wq"] * inv_scale, lw["wk"], lw["wv"]], axis=-1)
    bqkv = jnp.concatenate([lw["bq"] * inv_scale, lw["bk"], lw["bv"]], axis=-1)

    # Pack all small per-layer vectors into one (L, 8, MW) slab -> 1 DMA/step.
    mw = max(3 * e, hid)

    def row(v):
        v2 = v.reshape(num_layers, -1)
        return jnp.pad(v2, ((0, 0), (0, mw - v2.shape[1])))

    vec = jnp.stack([row(bqkv), row(lw["bo"]), row(lw["g1"]), row(lw["be1"]),
                     row(lw["b1"]), row(lw["b2"]), row(lw["g2"]),
                     row(lw["be2"])], axis=1).astype(jnp.float32)

    cdt = jnp.dtype(compute_dtype)
    return dict(
        scale_w=params["scale_w"].astype(cdt),
        scale_b=params["scale_b"],
        pos=params["pos_emb"],
        wqkv=wqkv.astype(cdt),
        wo=lw["wo"].astype(cdt),
        w1=lw["w1"].astype(cdt),
        w2=lw["w2"].astype(cdt),
        vec=vec,
    )


# ----------------------------------------------------------------------------
# Encoder wrapper
# ----------------------------------------------------------------------------
def encoder_forward(x, mask, params, *, heads, batch_chunks=None,
                    approx_recip=True, compute_dtype=jnp.float32):
    n, s, f = x.shape
    e = params["scale_w"].shape[1]
    if batch_chunks is None:
        batch_chunks = _default_batch_chunks(n)
    assert n % batch_chunks == 0
    cb = n // batch_chunks

    w = prepare_weights(params, compute_dtype=compute_dtype)
    num_layers = w["wqkv"].shape[0]
    hid = w["w1"].shape[2]
    mw = w["vec"].shape[-1]
    pos = w["pos"][:s]
    # Precompute the additive mask bias once (no per-layer compare/select).
    bias = jnp.where(mask == 0, jnp.float32(-1e20), jnp.float32(0.0))

    kernel = functools.partial(_encoder_kernel, heads=heads, hidden=hid,
                               approx_recip=approx_recip)

    def chunk_spec(*tail):      # per-batch-chunk blocks, resident over layers
        t = len(tail)
        return pl.BlockSpec((cb,) + tail, lambda c, l: (c,) + (0,) * t)

    def const_spec(*shape):     # grid-invariant blocks (embed weights, pos)
        r = len(shape)
        return pl.BlockSpec(shape, lambda c, l: (0,) * r)

    def layer_spec(*tail):      # per-layer stacked weights, streamed over l
        t = len(tail)
        return pl.BlockSpec((1,) + tail, lambda c, l: (l,) + (0,) * t)

    return pl.pallas_call(
        kernel,
        out_shape=jax.ShapeDtypeStruct((n, s, e), jnp.float32),
        grid_spec=pltpu.PrefetchScalarGridSpec(
            num_scalar_prefetch=0,
            grid=(batch_chunks, num_layers),
            in_specs=[
                chunk_spec(s, f),               # x (raw features, read at l==0)
                chunk_spec(s, s),               # additive mask bias
                const_spec(f, e),               # scaling weight
                const_spec(1, e),               # scaling bias
                const_spec(s, e),               # positional embedding rows
                layer_spec(e, 3 * e),           # fused wqkv
                layer_spec(e, e),               # wo
                layer_spec(e, hid),             # ffn w1
                layer_spec(hid, e),             # ffn w2
                layer_spec(_NUM_VEC_ROWS, mw),  # packed per-layer vectors
            ],
            out_specs=pl.BlockSpec((cb, s, e), lambda c, l: (c, 0, 0)),
        ),
        compiler_params=pltpu.CompilerParams(
            dimension_semantics=("parallel", "arbitrary"),
            vmem_limit_bytes=_vmem_limit_bytes()),
    )(x, bias, w["scale_w"], w["scale_b"], pos,
      w["wqkv"], w["wo"], w["w1"], w["w2"], w["vec"])


# ----------------------------------------------------------------------------
# Deterministic parameter init (stacked per-layer weights) + pure-JAX reference
# ----------------------------------------------------------------------------
def init_params(key, src_vocab, embed, num_layers, heads, fexp, max_length):
    hid = fexp * embed

    def lin(k, fin, fout):
        kw, kb = jax.random.split(k)
        return (jax.random.normal(kw, (fin, fout), jnp.float32) * 0.05,
                jax.random.normal(kb, (1, fout), jnp.float32) * 0.01)

    keys = jax.random.split(key, 2 + num_layers)
    scale_w, scale_b = lin(keys[0], src_vocab, embed)
    pos_emb = jax.random.normal(keys[1], (max_length, embed), jnp.float32) * 0.05

    per_layer = []
    for li in range(num_layers):
        ks = jax.random.split(keys[2 + li], 6)
        wq, bq = lin(ks[0], embed, embed)
        wk, bk = lin(ks[1], embed, embed)
        wv, bv = lin(ks[2], embed, embed)
        wo, bo = lin(ks[3], embed, embed)
        w1, b1 = lin(ks[4], embed, hid)
        w2, b2 = lin(ks[5], hid, embed)
        per_layer.append(dict(
            wq=wq, bq=bq, wk=wk, bk=bk, wv=wv, bv=bv, wo=wo, bo=bo,
            g1=jnp.ones((1, embed), jnp.float32),
            be1=jnp.zeros((1, embed), jnp.float32),
            w1=w1, b1=b1, w2=w2, b2=b2,
            g2=jnp.ones((1, embed), jnp.float32),
            be2=jnp.zeros((1, embed), jnp.float32),
        ))
    stacked = {k: jnp.stack([lp[k] for lp in per_layer], axis=0)
               for k in per_layer[0]}
    return dict(scale_w=scale_w, scale_b=scale_b, pos_emb=pos_emb,
                layers=stacked)


def encoder_reference(x, mask, params, *, heads):
    n, s, _ = x.shape
    e = params["scale_w"].shape[1]
    d = e // heads
    out = x @ params["scale_w"] + params["scale_b"] + params["pos_emb"][:s][None]

    def ln(v, g, b, eps=1e-5):
        mu = v.mean(-1, keepdims=True)
        var = ((v - mu) ** 2).mean(-1, keepdims=True)
        return (v - mu) / jnp.sqrt(var + eps) * g + b

    lw = params["layers"]
    for li in range(lw["wq"].shape[0]):
        q = (out @ lw["wq"][li] + lw["bq"][li]).reshape(n, s, heads, d)
        k = (out @ lw["wk"][li] + lw["bk"][li]).reshape(n, s, heads, d)
        v = (out @ lw["wv"][li] + lw["bv"][li]).reshape(n, s, heads, d)
        energy = jnp.einsum("nqhd,nkhd->nhqk", q, k)
        energy = jnp.where(mask[:, None, :, :] == 0, -1e20, energy)
        attn = jax.nn.softmax(energy / (e ** 0.5), axis=3)
        o = jnp.einsum("nhql,nlhd->nqhd", attn, v).reshape(n, s, e)
        o = o @ lw["wo"][li] + lw["bo"][li]
        x1 = ln(o + out, lw["g1"][li], lw["be1"][li])
        ff = jnp.maximum(x1 @ lw["w1"][li] + lw["b1"][li], 0.0) @ lw["w2"][li] \
            + lw["b2"][li]
        out = ln(ff + x1, lw["g2"][li], lw["be2"][li])
    return out


# ----------------------------------------------------------------------------
if __name__ == "__main__":
    N, S = 2, 8
    SRC_VOCAB = 80          # feature dim (== 80 -> no permute branch)
    EMBED = 32
    HEADS = 4
    NUM_LAYERS = 2
    FEXP = 2
    MAX_LEN = 16

    key = jax.random.PRNGKey(0)
    kx, kp = jax.random.split(key)
    x = jax.random.normal(kx, (N, S, SRC_VOCAB), jnp.float32)
    # attention mask: 1 = keep, 0 = masked (-1e20); exercise masking on batch 1
    mask = jnp.ones((N, S, S), jnp.float32).at[1, :, 6:].set(0.0)

    params = init_params(kp, SRC_VOCAB, EMBED, NUM_LAYERS, HEADS, FEXP, MAX_LEN)
    ref = encoder_reference(x, mask, params, heads=HEADS)

    # 1) exact path: f32 matmuls, exact softmax reciprocal, single batch chunk.
    out = jax.block_until_ready(
        encoder_forward(x, mask, params, heads=HEADS, batch_chunks=1,
                        approx_recip=False, compute_dtype=jnp.float32))
    assert out.shape == (N, S, EMBED)
    assert jnp.allclose(out, ref, rtol=1e-4, atol=1e-4), "f32 exact mismatch"

    # 2) auto chunking (2 chunks only on 2-TensorCore chips) + EUP reciprocal.
    out_auto = jax.block_until_ready(
        encoder_forward(x, mask, params, heads=HEADS,
                        approx_recip=True, compute_dtype=jnp.float32))
    assert jnp.allclose(out_auto, ref, rtol=1e-2, atol=1e-2), "auto mismatch"

    # 3) explicit 2-chunk path (exercises the "parallel" grid axis everywhere).
    out_mc = jax.block_until_ready(
        encoder_forward(x, mask, params, heads=HEADS, batch_chunks=2,
                        approx_recip=True, compute_dtype=jnp.float32))
    assert jnp.allclose(out_mc, ref, rtol=1e-2, atol=1e-2), "2-chunk mismatch"

    # 4) bf16 matmul operands (v6e/v7x MXU rate), f32 accumulate/softmax/LN.
    out_bf16 = jax.block_until_ready(
        encoder_forward(x, mask, params, heads=HEADS, batch_chunks=1,
                        approx_recip=True, compute_dtype=jnp.bfloat16))
    assert jnp.allclose(out_bf16, ref, rtol=2e-1, atol=2e-1), "bf16 mismatch"

    print("KERNEL_OK")
</pallas_src>

<mosaic_0001>
module attributes {stable_mosaic.version = 11 : i64} {
  func.func @_encoder_kernel(%arg0: i32, %arg1: i32, %arg2: memref<2x8x80xf32, #tpu.memory_space<vmem>>, %arg3: memref<2x8x8xf32, #tpu.memory_space<vmem>>, %arg4: memref<80x32xf32, #tpu.memory_space<vmem>>, %arg5: memref<1x32xf32, #tpu.memory_space<vmem>>, %arg6: memref<8x32xf32, #tpu.memory_space<vmem>>, %arg7: memref<1x32x96xf32, #tpu.memory_space<vmem>>, %arg8: memref<1x32x32xf32, #tpu.memory_space<vmem>>, %arg9: memref<1x32x64xf32, #tpu.memory_space<vmem>>, %arg10: memref<1x64x32xf32, #tpu.memory_space<vmem>>, %arg11: memref<1x8x96xf32, #tpu.memory_space<vmem>>, %arg12: memref<2x8x32xf32, #tpu.memory_space<vmem>>) attributes {dimension_semantics = [#tpu.dimension_semantics<parallel>, #tpu.dimension_semantics<arbitrary>], iteration_bounds = array<i64: 1, 2>, scalar_prefetch = 0 : i64, scratch_operands = 0 : i64, tpu.core_type = #tpu.core_type<tc>, window_params = [{transform_indices = @transform_0, window_bounds = array<i64: 2, 8, 80>}, {transform_indices = @transform_1, window_bounds = array<i64: 2, 8, 8>}, {pipeline_mode = #tpu.pipeline_mode<synchronous>, transform_indices = @transform_2, window_bounds = array<i64: 80, 32>}, {pipeline_mode = #tpu.pipeline_mode<synchronous>, transform_indices = @transform_3, window_bounds = array<i64: 1, 32>}, {pipeline_mode = #tpu.pipeline_mode<synchronous>, transform_indices = @transform_4, window_bounds = array<i64: 8, 32>}, {transform_indices = @transform_5, window_bounds = array<i64: 1, 32, 96>}, {transform_indices = @transform_6, window_bounds = array<i64: 1, 32, 32>}, {transform_indices = @transform_7, window_bounds = array<i64: 1, 32, 64>}, {transform_indices = @transform_8, window_bounds = array<i64: 1, 64, 32>}, {transform_indices = @transform_9, window_bounds = array<i64: 1, 8, 96>}, {transform_indices = @transform_10, window_bounds = array<i64: 2, 8, 32>}]} {
    %c0_i32 = arith.constant 0 : i32
    %0 = arith.cmpi eq, %arg1, %c0_i32 : i32
    %1 = arith.extui %0 : i1 to i32
    %c0_i32_0 = arith.constant 0 : i32
    %2 = arith.cmpi ne, %1, %c0_i32_0 : i32
    scf.if %2 {
      %c0_42 = arith.constant 0 : index
      %c0_43 = arith.constant 0 : index
      %c0_44 = arith.constant 0 : index
      %155 = vector.load %arg2[%c0_42, %c0_43, %c0_44] : memref<2x8x80xf32, #tpu.memory_space<vmem>>, vector<2x8x80xf32>
      %156 = vector.shape_cast %155 : vector<2x8x80xf32> to vector<16x80xf32>
      %c0_45 = arith.constant 0 : index
      %c0_46 = arith.constant 0 : index
      %157 = vector.load %arg4[%c0_45, %c0_46] : memref<80x32xf32, #tpu.memory_space<vmem>>, vector<80x32xf32>
      %cst_47 = arith.constant dense<0.000000e+00> : vector<16x32xf32>
      %158 = tpu.matmul %156, %157, %cst_47 {dimension_numbers = #tpu.dot_dimension_numbers<[1], [0], [0], [1], [0, 0, 1, 1], [], []>} : vector<16x80xf32>, vector<80x32xf32>, vector<16x32xf32> -> vector<16x32xf32>
      %c0_48 = arith.constant 0 : index
      %c0_49 = arith.constant 0 : index
      %159 = vector.load %arg5[%c0_48, %c0_49] : memref<1x32xf32, #tpu.memory_space<vmem>>, vector<1x32xf32>
      %160 = vector.broadcast %159 : vector<1x32xf32> to vector<16x32xf32>
      %161 = arith.addf %158, %160 : vector<16x32xf32>
      %162 = vector.shape_cast %161 : vector<16x32xf32> to vector<2x8x32xf32>
      %c0_50 = arith.constant 0 : index
      %c0_51 = arith.constant 0 : index
      %163 = vector.load %arg6[%c0_50, %c0_51] : memref<8x32xf32, #tpu.memory_space<vmem>>, vector<8x32xf32>
      %164 = vector.shape_cast %163 : vector<8x32xf32> to vector<1x8x32xf32>
      %165 = vector.broadcast %164 : vector<1x8x32xf32> to vector<2x8x32xf32>
      %166 = arith.addf %162, %165 : vector<2x8x32xf32>
      %c0_52 = arith.constant 0 : index
      %c0_53 = arith.constant 0 : index
      %c0_54 = arith.constant 0 : index
      %167 = vector.load %arg12[%c0_52, %c0_53, %c0_54] : memref<2x8x32xf32, #tpu.memory_space<vmem>>, vector<2x8x32xf32>
      tpu.vector_store %arg12[%c0_52, %c0_53, %c0_54], %166 {strides = array<i32>} : memref<2x8x32xf32, #tpu.memory_space<vmem>>, vector<2x8x32xf32>,
    } else {
    }
    %c0 = arith.constant 0 : index
    %c0_1 = arith.constant 0 : index
    %c0_2 = arith.constant 0 : index
    %3 = vector.load %arg12[%c0, %c0_1, %c0_2] : memref<2x8x32xf32, #tpu.memory_space<vmem>>, vector<2x8x32xf32>
    %4 = vector.shape_cast %3 : vector<2x8x32xf32> to vector<16x32xf32>
    %c0_3 = arith.constant 0 : index
    %c0_4 = arith.constant 0 : index
    %c0_5 = arith.constant 0 : index
    %5 = vector.load %arg11[%c0_3, %c0_4, %c0_5] : memref<1x8x96xf32, #tpu.memory_space<vmem>>, vector<1x8x96xf32>
    %6 = vector.shape_cast %5 : vector<1x8x96xf32> to vector<8x96xf32>
    %7 = vector.extract_strided_slice %6 {offsets = [0, 0], sizes = [1, 96], strides = [1, 1]} : vector<8x96xf32> to vector<1x96xf32>
    %8 = vector.extract_strided_slice %6 {offsets = [1, 0], sizes = [1, 32], strides = [1, 1]} : vector<8x96xf32> to vector<1x32xf32>
    %9 = vector.extract_strided_slice %6 {offsets = [2, 0], sizes = [1, 32], strides = [1, 1]} : vector<8x96xf32> to vector<1x32xf32>
    %10 = vector.extract_strided_slice %6 {offsets = [3, 0], sizes = [1, 32], strides = [1, 1]} : vector<8x96xf32> to vector<1x32xf32>
    %11 = vector.extract_strided_slice %6 {offsets = [4, 0], sizes = [1, 64], strides = [1, 1]} : vector<8x96xf32> to vector<1x64xf32>
    %12 = vector.extract_strided_slice %6 {offsets = [5, 0], sizes = [1, 32], strides = [1, 1]} : vector<8x96xf32> to vector<1x32xf32>
    %13 = vector.extract_strided_slice %6 {offsets = [6, 0], sizes = [1, 32], strides = [1, 1]} : vector<8x96xf32> to vector<1x32xf32>
    %14 = vector.extract_strided_slice %6 {offsets = [7, 0], sizes = [1, 32], strides = [1, 1]} : vector<8x96xf32> to vector<1x32xf32>
    %c0_6 = arith.constant 0 : index
    %c0_7 = arith.constant 0 : index
    %c0_8 = arith.constant 0 : index
    %15 = vector.load %arg7[%c0_6, %c0_7, %c0_8] : memref<1x32x96xf32, #tpu.memory_space<vmem>>, vector<1x32x96xf32>
    %16 = vector.shape_cast %15 : vector<1x32x96xf32> to vector<32x96xf32>
    %cst = arith.constant dense<0.000000e+00> : vector<16x96xf32>
    %17 = tpu.matmul %4, %16, %cst {dimension_numbers = #tpu.dot_dimension_numbers<[1], [0], [0], [1], [0, 0, 1, 1], [], []>} : vector<16x32xf32>, vector<32x96xf32>, vector<16x96xf32> -> vector<16x96xf32>
    %18 = vector.broadcast %7 : vector<1x96xf32> to vector<16x96xf32>
    %19 = arith.addf %17, %18 : vector<16x96xf32>
    %20 = vector.extract_strided_slice %19 {offsets = [0, 0], sizes = [16, 32], strides = [1, 1]} : vector<16x96xf32> to vector<16x32xf32>
    %21 = vector.extract_strided_slice %20 {offsets = [0, 0], sizes = [16, 8], strides = [1, 1]} : vector<16x32xf32> to vector<16x8xf32>
    %22 = vector.shape_cast %21 : vector<16x8xf32> to vector<2x8x8xf32>
    %23 = vector.extract_strided_slice %20 {offsets = [0, 8], sizes = [16, 8], strides = [1, 1]} : vector<16x32xf32> to vector<16x8xf32>
    %24 = vector.shape_cast %23 : vector<16x8xf32> to vector<2x8x8xf32>
    %25 = vector.extract_strided_slice %20 {offsets = [0, 16], sizes = [16, 8], strides = [1, 1]} : vector<16x32xf32> to vector<16x8xf32>
    %26 = vector.shape_cast %25 : vector<16x8xf32> to vector<2x8x8xf32>
    %27 = vector.extract_strided_slice %20 {offsets = [0, 24], sizes = [16, 8], strides = [1, 1]} : vector<16x32xf32> to vector<16x8xf32>
    %28 = vector.shape_cast %27 : vector<16x8xf32> to vector<2x8x8xf32>
    %29 = vector.shape_cast %22 : vector<2x8x8xf32> to vector<2x1x8x8xf32>
    %30 = vector.shape_cast %24 : vector<2x8x8xf32> to vector<2x1x8x8xf32>
    %31 = vector.shape_cast %26 : vector<2x8x8xf32> to vector<2x1x8x8xf32>
    %32 = vector.shape_cast %28 : vector<2x8x8xf32> to vector<2x1x8x8xf32>
    %33 = tpu.concatenate %29, %30, %31, %32 in 1 : vector<2x1x8x8xf32>, vector<2x1x8x8xf32>, vector<2x1x8x8xf32>, vector<2x1x8x8xf32> -> vector<2x4x8x8xf32>
    %34 = vector.shape_cast %33 : vector<2x4x8x8xf32> to vector<8x8x8xf32>
    %35 = vector.extract_strided_slice %19 {offsets = [0, 32], sizes = [16, 32], strides = [1, 1]} : vector<16x96xf32> to vector<16x32xf32>
    %36 = vector.extract_strided_slice %35 {offsets = [0, 0], sizes = [16, 8], strides = [1, 1]} : vector<16x32xf32> to vector<16x8xf32>
    %37 = vector.shape_cast %36 : vector<16x8xf32> to vector<2x8x8xf32>
    %38 = vector.extract_strided_slice %35 {offsets = [0, 8], sizes = [16, 8], strides = [1, 1]} : vector<16x32xf32> to vector<16x8xf32>
    %39 = vector.shape_cast %38 : vector<16x8xf32> to vector<2x8x8xf32>
    %40 = vector.extract_strided_slice %35 {offsets = [0, 16], sizes = [16, 8], strides = [1, 1]} : vector<16x32xf32> to vector<16x8xf32>
    %41 = vector.shape_cast %40 : vector<16x8xf32> to vector<2x8x8xf32>
    %42 = vector.extract_strided_slice %35 {offsets = [0, 24], sizes = [16, 8], strides = [1, 1]} : vector<16x32xf32> to vector<16x8xf32>
    %43 = vector.shape_cast %42 : vector<16x8xf32> to vector<2x8x8xf32>
    %44 = vector.shape_cast %37 : vector<2x8x8xf32> to vector<2x1x8x8xf32>
    %45 = vector.shape_cast %39 : vector<2x8x8xf32> to vector<2x1x8x8xf32>
    %46 = vector.shape_cast %41 : vector<2x8x8xf32> to vector<2x1x8x8xf32>
    %47 = vector.shape_cast %43 : vector<2x8x8xf32> to vector<2x1x8x8xf32>
    %48 = tpu.concatenate %44, %45, %46, %47 in 1 : vector<2x1x8x8xf32>, vector<2x1x8x8xf32>, vector<2x1x8x8xf32>, vector<2x1x8x8xf32> -> vector<2x4x8x8xf32>
    %49 = vector.shape_cast %48 : vector<2x4x8x8xf32> to vector<8x8x8xf32>
    %50 = vector.extract_strided_slice %19 {offsets = [0, 64], sizes = [16, 32], strides = [1, 1]} : vector<16x96xf32> to vector<16x32xf32>
    %51 = vector.extract_strided_slice %50 {offsets = [0, 0], sizes = [16, 8], strides = [1, 1]} : vector<16x32xf32> to vector<16x8xf32>
    %52 = vector.shape_cast %51 : vector<16x8xf32> to vector<2x8x8xf32>
    %53 = vector.extract_strided_slice %50 {offsets = [0, 8], sizes = [16, 8], strides = [1, 1]} : vector<16x32xf32> to vector<16x8xf32>
    %54 = vector.shape_cast %53 : vector<16x8xf32> to vector<2x8x8xf32>
    %55 = vector.extract_strided_slice %50 {offsets = [0, 16], sizes = [16, 8], strides = [1, 1]} : vector<16x32xf32> to vector<16x8xf32>
    %56 = vector.shape_cast %55 : vector<16x8xf32> to vector<2x8x8xf32>
    %57 = vector.extract_strided_slice %50 {offsets = [0, 24], sizes = [16, 8], strides = [1, 1]} : vector<16x32xf32> to vector<16x8xf32>
    %58 = vector.shape_cast %57 : vector<16x8xf32> to vector<2x8x8xf32>
    %59 = vector.shape_cast %52 : vector<2x8x8xf32> to vector<2x1x8x8xf32>
    %60 = vector.shape_cast %54 : vector<2x8x8xf32> to vector<2x1x8x8xf32>
    %61 = vector.shape_cast %56 : vector<2x8x8xf32> to vector<2x1x8x8xf32>
    %62 = vector.shape_cast %58 : vector<2x8x8xf32> to vector<2x1x8x8xf32>
    %63 = tpu.concatenate %59, %60, %61, %62 in 1 : vector<2x1x8x8xf32>, vector<2x1x8x8xf32>, vector<2x1x8x8xf32>, vector<2x1x8x8xf32> -> vector<2x4x8x8xf32>
    %64 = vector.shape_cast %63 : vector<2x4x8x8xf32> to vector<8x8x8xf32>
    "tpu.trace_start"() <{level = 10 : i32, message = "nqd,nkd->nqk"}> : () -> ()
    %cst_9 = arith.constant dense<0.000000e+00> : vector<8x8x8xf32>
    %65 = tpu.matmul %34, %49, %cst_9 {dimension_numbers = #tpu.dot_dimension_numbers<[2], [2], [1], [1], [0, 0, 0, 1, 1, 1], [0], [0]>} : vector<8x8x8xf32>, vector<8x8x8xf32>, vector<8x8x8xf32> -> vector<8x8x8xf32>
    "tpu.trace_stop"() : () -> ()
    %66 = vector.shape_cast %65 : vector<8x8x8xf32> to vector<2x4x8x8xf32>
    %c0_10 = arith.constant 0 : index
    %c0_11 = arith.constant 0 : index
    %c0_12 = arith.constant 0 : index
    %67 = vector.load %arg3[%c0_10, %c0_11, %c0_12] : memref<2x8x8xf32, #tpu.memory_space<vmem>>, vector<2x8x8xf32>
    %68 = vector.shape_cast %67 : vector<2x8x8xf32> to vector<2x1x8x8xf32>
    %69 = vector.broadcast %68 : vector<2x1x8x8xf32> to vector<2x4x8x8xf32>
    %70 = arith.addf %66, %69 : vector<2x4x8x8xf32>
    %cst_13 = arith.constant dense<0xFF800000> : vector<2x4x8xf32>
    %71 = vector.multi_reduction <maximumf>, %70, %cst_13 [3] : vector<2x4x8x8xf32> to vector<2x4x8xf32>
    %72 = vector.shape_cast %71 : vector<2x4x8xf32> to vector<2x4x8x1xf32>
    %73 = vector.broadcast %72 : vector<2x4x8x1xf32> to vector<2x4x8x8xf32>
    %74 = arith.subf %70, %73 : vector<2x4x8x8xf32>
    %75 = math.exp %74 : vector<2x4x8x8xf32>
    %cst_14 = arith.constant dense<0.000000e+00> : vector<2x4x8xf32>
    %76 = vector.multi_reduction <add>, %75, %cst_14 [3] : vector<2x4x8x8xf32> to vector<2x4x8xf32>
    %77 = vector.shape_cast %76 : vector<2x4x8xf32> to vector<2x4x8x1xf32>
    %78 = vector.shape_cast %75 : vector<2x4x8x8xf32> to vector<8x8x8xf32>
    "tpu.trace_start"() <{level = 10 : i32, message = "nqk,nkd->nqd"}> : () -> ()
    %cst_15 = arith.constant dense<0.000000e+00> : vector<8x8x8xf32>
    %79 = tpu.matmul %78, %64, %cst_15 {dimension_numbers = #tpu.dot_dimension_numbers<[2], [1], [1], [2], [0, 0, 0, 1, 1, 2], [0], [0]>} : vector<8x8x8xf32>, vector<8x8x8xf32>, vector<8x8x8xf32> -> vector<8x8x8xf32>
    "tpu.trace_stop"() : () -> ()
    %80 = vector.shape_cast %79 : vector<8x8x8xf32> to vector<2x4x8x8xf32>
    %81 = tpu.reciprocal %77 : vector<2x4x8x1xf32> -> vector<2x4x8x1xf32>
    %82 = vector.broadcast %81 : vector<2x4x8x1xf32> to vector<2x4x8x8xf32>
    %83 = arith.mulf %80, %82 : vector<2x4x8x8xf32>
    %84 = vector.extract_strided_slice %83 {offsets = [0, 0, 0, 0], sizes = [2, 1, 8, 8], strides = [1, 1, 1, 1]} : vector<2x4x8x8xf32> to vector<2x1x8x8xf32>
    %85 = vector.shape_cast %84 : vector<2x1x8x8xf32> to vector<2x8x8xf32>
    %86 = vector.extract_strided_slice %83 {offsets = [0, 1, 0, 0], sizes = [2, 1, 8, 8], strides = [1, 1, 1, 1]} : vector<2x4x8x8xf32> to vector<2x1x8x8xf32>
    %87 = vector.shape_cast %86 : vector<2x1x8x8xf32> to vector<2x8x8xf32>
    %88 = vector.extract_strided_slice %83 {offsets = [0, 2, 0, 0], sizes = [2, 1, 8, 8], strides = [1, 1, 1, 1]} : vector<2x4x8x8xf32> to vector<2x1x8x8xf32>
    %89 = vector.shape_cast %88 : vector<2x1x8x8xf32> to vector<2x8x8xf32>
    %90 = vector.extract_strided_slice %83 {offsets = [0, 3, 0, 0], sizes = [2, 1, 8, 8], strides = [1, 1, 1, 1]} : vector<2x4x8x8xf32> to vector<2x1x8x8xf32>
    %91 = vector.shape_cast %90 : vector<2x1x8x8xf32> to vector<2x8x8xf32>
    %92 = tpu.concatenate %85, %87, %89, %91 in 2 : vector<2x8x8xf32>, vector<2x8x8xf32>, vector<2x8x8xf32>, vector<2x8x8xf32> -> vector<2x8x32xf32>
    %93 = vector.shape_cast %92 : vector<2x8x32xf32> to vector<16x32xf32>
    %c0_16 = arith.constant 0 : index
    %c0_17 = arith.constant 0 : index
    %c0_18 = arith.constant 0 : index
    %94 = vector.load %arg8[%c0_16, %c0_17, %c0_18] : memref<1x32x32xf32, #tpu.memory_space<vmem>>, vector<1x32x32xf32>
    %95 = vector.shape_cast %94 : vector<1x32x32xf32> to vector<32x32xf32>
    %cst_19 = arith.constant dense<0.000000e+00> : vector<16x32xf32>
    %96 = tpu.matmul %93, %95, %cst_19 {dimension_numbers = #tpu.dot_dimension_numbers<[1], [0], [0], [1], [0, 0, 1, 1], [], []>} : vector<16x32xf32>, vector<32x32xf32>, vector<16x32xf32> -> vector<16x32xf32>
    %97 = vector.broadcast %8 : vector<1x32xf32> to vector<16x32xf32>
    %98 = arith.addf %96, %97 : vector<16x32xf32>
    %99 = arith.addf %98, %4 : vector<16x32xf32>
    %cst_20 = arith.constant dense<0.000000e+00> : vector<16xf32>
    %100 = vector.multi_reduction <add>, %99, %cst_20 [1] : vector<16x32xf32> to vector<16xf32>
    %101 = vector.shape_cast %100 : vector<16xf32> to vector<16x1xf32>
    %cst_21 = arith.constant 3.200000e+01 : f32
    %102 = vector.broadcast %cst_21 : f32 to vector<16x1xf32>
    %103 = arith.divf %101, %102 : vector<16x1xf32>
    %104 = vector.broadcast %103 : vector<16x1xf32> to vector<16x32xf32>
    %105 = arith.subf %99, %104 : vector<16x32xf32>
    %106 = arith.mulf %105, %105 : vector<16x32xf32>
    %cst_22 = arith.constant dense<0.000000e+00> : vector<16xf32>
    %107 = vector.multi_reduction <add>, %106, %cst_22 [1] : vector<16x32xf32> to vector<16xf32>
    %108 = vector.shape_cast %107 : vector<16xf32> to vector<16x1xf32>
    %cst_23 = arith.constant 3.200000e+01 : f32
    %109 = vector.broadcast %cst_23 : f32 to vector<16x1xf32>
    %110 = arith.divf %108, %109 : vector<16x1xf32>
    %cst_24 = arith.constant 9.99999974E-6 : f32
    %111 = vector.broadcast %cst_24 : f32 to vector<16x1xf32>
    %112 = arith.addf %110, %111 : vector<16x1xf32>
    %113 = math.rsqrt %112 : vector<16x1xf32>
    %114 = vector.broadcast %113 : vector<16x1xf32> to vector<16x32xf32>
    %115 = arith.mulf %105, %114 : vector<16x32xf32>
    %116 = vector.broadcast %9 : vector<1x32xf32> to vector<16x32xf32>
    %117 = arith.mulf %115, %116 : vector<16x32xf32>
    %118 = vector.broadcast %10 : vector<1x32xf32> to vector<16x32xf32>
    %119 = arith.addf %117, %118 : vector<16x32xf32>
    %c0_25 = arith.constant 0 : index
    %c0_26 = arith.constant 0 : index
    %c0_27 = arith.constant 0 : index
    %120 = vector.load %arg9[%c0_25, %c0_26, %c0_27] : memref<1x32x64xf32, #tpu.memory_space<vmem>>, vector<1x32x64xf32>
    %121 = vector.shape_cast %120 : vector<1x32x64xf32> to vector<32x64xf32>
    %cst_28 = arith.constant dense<0.000000e+00> : vector<16x64xf32>
    %122 = tpu.matmul %119, %121, %cst_28 {dimension_numbers = #tpu.dot_dimension_numbers<[1], [0], [0], [1], [0, 0, 1, 1], [], []>} : vector<16x32xf32>, vector<32x64xf32>, vector<16x64xf32> -> vector<16x64xf32>
    %123 = vector.broadcast %11 : vector<1x64xf32> to vector<16x64xf32>
    %124 = arith.addf %122, %123 : vector<16x64xf32>
    %cst_29 = arith.constant 0.000000e+00 : f32
    %125 = vector.broadcast %cst_29 : f32 to vector<16x64xf32>
    %126 = arith.maximumf %124, %125 : vector<16x64xf32>
    %c0_30 = arith.constant 0 : index
    %c0_31 = arith.constant 0 : index
    %c0_32 = arith.constant 0 : index
    %127 = vector.load %arg10[%c0_30, %c0_31, %c0_32] : memref<1x64x32xf32, #tpu.memory_space<vmem>>, vector<1x64x32xf32>
    %128 = vector.shape_cast %127 : vector<1x64x32xf32> to vector<64x32xf32>
    %cst_33 = arith.constant dense<0.000000e+00> : vector<16x32xf32>
    %129 = tpu.matmul %126, %128, %cst_33 {dimension_numbers = #tpu.dot_dimension_numbers<[1], [0], [0], [1], [0, 0, 1, 1], [], []>} : vector<16x64xf32>, vector<64x32xf32>, vector<16x32xf32> -> vector<16x32xf32>
    %130 = vector.broadcast %12 : vector<1x32xf32> to vector<16x32xf32>
    %131 = arith.addf %129, %130 : vector<16x32xf32>
    %132 = arith.addf %131, %119 : vector<16x32xf32>
    %cst_34 = arith.constant dense<0.000000e+00> : vector<16xf32>
    %133 = vector.multi_reduction <add>, %132, %cst_34 [1] : vector<16x32xf32> to vector<16xf32>
    %134 = vector.shape_cast %133 : vector<16xf32> to vector<16x1xf32>
    %cst_35 = arith.constant 3.200000e+01 : f32
    %135 = vector.broadcast %cst_35 : f32 to vector<16x1xf32>
    %136 = arith.divf %134, %135 : vector<16x1xf32>
    %137 = vector.broadcast %136 : vector<16x1xf32> to vector<16x32xf32>
    %138 = arith.subf %132, %137 : vector<16x32xf32>
    %139 = arith.mulf %138, %138 : vector<16x32xf32>
    %cst_36 = arith.constant dense<0.000000e+00> : vector<16xf32>
    %140 = vector.multi_reduction <add>, %139, %cst_36 [1] : vector<16x32xf32> to vector<16xf32>
    %141 = vector.shape_cast %140 : vector<16xf32> to vector<16x1xf32>
    %cst_37 = arith.constant 3.200000e+01 : f32
    %142 = vector.broadcast %cst_37 : f32 to vector<16x1xf32>
    %143 = arith.divf %141, %142 : vector<16x1xf32>
    %cst_38 = arith.constant 9.99999974E-6 : f32
    %144 = vector.broadcast %cst_38 : f32 to vector<16x1xf32>
    %145 = arith.addf %143, %144 : vector<16x1xf32>
    %146 = math.rsqrt %145 : vector<16x1xf32>
    %147 = vector.broadcast %146 : vector<16x1xf32> to vector<16x32xf32>
    %148 = arith.mulf %138, %147 : vector<16x32xf32>
    %149 = vector.broadcast %13 : vector<1x32xf32> to vector<16x32xf32>
    %150 = arith.mulf %148, %149 : vector<16x32xf32>
    %151 = vector.broadcast %14 : vector<1x32xf32> to vector<16x32xf32>
    %152 = arith.addf %150, %151 : vector<16x32xf32>
    %153 = vector.shape_cast %152 : vector<16x32xf32> to vector<2x8x32xf32>
    %c0_39 = arith.constant 0 : index
    %c0_40 = arith.constant 0 : index
    %c0_41 = arith.constant 0 : index
    %154 = vector.load %arg12[%c0_39, %c0_40, %c0_41] : memref<2x8x32xf32, #tpu.memory_space<vmem>>, vector<2x8x32xf32>
    tpu.vector_store %arg12[%c0_39, %c0_40, %c0_41], %153 {strides = array<i32>} : memref<2x8x32xf32, #tpu.memory_space<vmem>>, vector<2x8x32xf32>,
    return
  }
  func.func @transform_0(%arg0: i32, %arg1: i32) -> (i32, i32, i32) {
    %c0_i32 = arith.constant 0 : i32
    %c0_i32_0 = arith.constant 0 : i32
    %c0_i32_1 = arith.constant 0 : i32
    return %arg0, %c0_i32, %c0_i32_0 : i32, i32, i32
  }
  func.func @transform_1(%arg0: i32, %arg1: i32) -> (i32, i32, i32) {
    %c0_i32 = arith.constant 0 : i32
    %c0_i32_0 = arith.constant 0 : i32
    %c0_i32_1 = arith.constant 0 : i32
    return %arg0, %c0_i32, %c0_i32_0 : i32, i32, i32
  }
  func.func @transform_2(%arg0: i32, %arg1: i32) -> (i32, i32) {
    %c0_i32 = arith.constant 0 : i32
    %c0_i32_0 = arith.constant 0 : i32
    %c0_i32_1 = arith.constant 0 : i32
    return %c0_i32, %c0_i32_0 : i32, i32
  }
  func.func @transform_3(%arg0: i32, %arg1: i32) -> (i32, i32) {
    %c0_i32 = arith.constant 0 : i32
    %c0_i32_0 = arith.constant 0 : i32
    %c0_i32_1 = arith.constant 0 : i32
    return %c0_i32, %c0_i32_0 : i32, i32
  }
  func.func @transform_4(%arg0: i32, %arg1: i32) -> (i32, i32) {
    %c0_i32 = arith.constant 0 : i32
    %c0_i32_0 = arith.constant 0 : i32
    %c0_i32_1 = arith.constant 0 : i32
    return %c0_i32, %c0_i32_0 : i32, i32
  }
  func.func @transform_5(%arg0: i32, %arg1: i32) -> (i32, i32, i32) {
    %c0_i32 = arith.constant 0 : i32
    %c0_i32_0 = arith.constant 0 : i32
    %c0_i32_1 = arith.constant 0 : i32
    return %arg1, %c0_i32, %c0_i32_0 : i32, i32, i32
  }
  func.func @transform_6(%arg0: i32, %arg1: i32) -> (i32, i32, i32) {
    %c0_i32 = arith.constant 0 : i32
    %c0_i32_0 = arith.constant 0 : i32
    %c0_i32_1 = arith.constant 0 : i32
    return %arg1, %c0_i32, %c0_i32_0 : i32, i32, i32
  }
  func.func @transform_7(%arg0: i32, %arg1: i32) -> (i32, i32, i32) {
    %c0_i32 = arith.constant 0 : i32
    %c0_i32_0 = arith.constant 0 : i32
    %c0_i32_1 = arith.constant 0 : i32
    return %arg1, %c0_i32, %c0_i32_0 : i32, i32, i32
  }
  func.func @transform_8(%arg0: i32, %arg1: i32) -> (i32, i32, i32) {
    %c0_i32 = arith.constant 0 : i32
    %c0_i32_0 = arith.constant 0 : i32
    %c0_i32_1 = arith.constant 0 : i32
    return %arg1, %c0_i32, %c0_i32_0 : i32, i32, i32
  }
  func.func @transform_9(%arg0: i32, %arg1: i32) -> (i32, i32, i32) {
    %c0_i32 = arith.constant 0 : i32
    %c0_i32_0 = arith.constant 0 : i32
    %c0_i32_1 = arith.constant 0 : i32
    return %arg1, %c0_i32, %c0_i32_0 : i32, i32, i32
  }
  func.func @transform_10(%arg0: i32, %arg1: i32) -> (i32, i32, i32) {
    %c0_i32 = arith.constant 0 : i32
    %c0_i32_0 = arith.constant 0 : i32
    %c0_i32_1 = arith.constant 0 : i32
    return %arg0, %c0_i32, %c0_i32_0 : i32, i32, i32
  }
}

</mosaic_0001>

<bundles_post_ra>
// kernel: tpu_custom_call.1
= control target key start
LH: loop header
LB: loop body
LE: loop exit
PB: predicated region body
PF: predicated region fallthrough
CT: control target
= control target key end

     0   :  { %15 = vsyncpa [#allocation3], 0  ;;  %s3034_s13 = smov 0   ;;  %s3036_s14 = smov 0   ;;  %s3340_s0 = inlined_call_operand.vmem [shape: f32[2,8,80], index: 0, kind: input, shape index: {}]   ;;  %s3341_s1 = inlined_call_operand.vmem [shape: f32[2,8,8], index: 1, kind: input, shape index: {}]   ;;  %s3342_s2 = inlined_call_operand.vmem [shape: f32[80,32], index: 2, kind: input, shape index: {}]   ;;  %s3343_s3 = inlined_call_operand.vmem [shape: f32[1,32], index: 3, kind: input, shape index: {}]   ;;  %s3344_s4 = inlined_call_operand.vmem [shape: f32[8,32], index: 4, kind: input, shape index: {}]   ;;  %s3345_s5 = inlined_call_operand.vmem [shape: f32[2,32,96], index: 5, kind: input, shape index: {}]   ;;  %s3346_s6 = inlined_call_operand.vmem [shape: f32[2,32,32], index: 6, kind: input, shape index: {}]   ;;  %s3347_s7 = inlined_call_operand.vmem [shape: f32[2,32,64], index: 7, kind: input, shape index: {}]   ;;  %s3348_s8 = inlined_call_operand.vmem [shape: f32[2,64,32], index: 8, kind: input, shape index: {}]   ;;  %s3349_s9 = inlined_call_operand.vmem [shape: f32[2,8,96], index: 9, kind: input, shape index: {}]   ;;  %s3350_s10 = inlined_call_operand.hbm [shape: f32[2,8,32], index: 10, kind: output, shape index: {}]  }
   0x1   :  { %s3038_s15 = smov 0  }
   0x2 LB: > { %s30_s17 = sadd.s32 1, %s2961_s14  ;;  %p2552_p1 = scmp.ge.s32.totalorder %s2965_s15, 1  ;;  %s2965_s15 = sphi %s3038_s15, %s21_s15   ;;  %s2961_s14 = sphi %s3036_s14, %s3356_s14   ;;  %s2957_s13 = sphi %s3034_s13, %s3355_s13  }
   0x3   : > { %p31_p0 = scmp.ge.s32.totalorder %s30_s17, 2  ;;  %p386_p2 = scmp.lt.s32.totalorder %s2965_s15, 3 }
   0x5   : > { %s3358_s17 = smov (%p31_p0, %s30_s17), 0  ;;  %p387_p3 = pnand %p2552_p1, %p386_p2 }
   0x6   : > { %3351 = sst [smem:[#allocation5_spill]] %s3358_s17  ;;  %p460_p4 = scmp.lt.s32.totalorder (!%p387_p3), %s2957_s13, 1 }
   0x7   : > { %390 = sbr.rel (%p387_p3) target bundleno = 2587 (0xa1b), region = 60  ;;  %p2562_p5 = scmp.ne.s32.totalorder (!%p387_p3), %s2957_s13, 0 }
   0xc   : > { %s461_s18 = scalar_select %p460_p4, %s2957_s13, 1 }
   0xe   : > { %s2602_s19 = sshll.u32 %s461_s18, 5  ;;  %s2605_s20 = sshll.u32 %s461_s18, 6 }
   0xf   : > { %s3056_s23 = scalar_lea.vmem %s3345_s5, %s2602_s19  ;;  %s3061_s26 = scalar_lea.vmem %s3346_s6, %s2602_s19 }
  0x10   : > { %s3066_s29 = scalar_lea.vmem %s3347_s7, %s2602_s19  ;;  %s3071_s12 = scalar_lea.vmem %s3348_s8, %s2605_s20 }
  0x11   : > { %s2561_s16 = sshll.u32 %s461_s18, 3  ;;  %488 = sbr.rel (%p2562_p5) target bundleno = 243 (0xf3), region = 64 }
  0x12   : > { %s3076_s22 = scalar_lea.vmem %s3349_s9, %s2561_s16 }
  0x16   : > { %v500_v0 = vld [vmem:[%s3342_s2 + $0x48] sm:$0xff]  ;;  %v499_v1 = vld [vmem:[%s3342_s2 + $0x40] sm:$0xff]  ;;  %vm508_vm0 = vcmask 654336   ;;  %v498_v2 = vld [vmem:[%s3342_s2 + $0x38] sm:$0xff]  ;;  %vm593_vm1 = vcmask 261120  }
  0x17   : > { %2678 = vmatprep.subr.mxu0 %v500_v0  ;;  %v489_v3 = vld [vmem:[%s3340_s0] sm:$0xff]  ;;  %v497_v4 = vld [vmem:[%s3342_s2 + $0x30] sm:$0xff]  ;;  %v496_v5 = vld [vmem:[%s3342_s2 + $0x28] sm:$0xff] }
  0x18   : > { %2679 = vmatpush3.msra.mxu0 %v500_v0  ;;  %2698 = vmatprep.mubr.msk.f32.mxu0 %vm508_vm0, %v489_v3  ;;  %v495_v6 = vld [vmem:[%s3342_s2 + $0x20] sm:$0xff]  ;;  %v494_v7 = vld [vmem:[%s3342_s2 + $0x18] sm:$0xff]  ;;  %v493_v8 = vld [vmem:[%s3342_s2 + $0x10] sm:$0xff] }
  0x19   : > { %2680 = vmatprep.subr.mxu0 %v499_v1  ;;  %v492_v9 = vld [vmem:[%s3342_s2 + $0x8] sm:$0xff]  ;;  %v491_v10 = vld [vmem:[%s3342_s2] sm:$0xff] }
  0x1a   : > { %2681 = vmatpush3.msra.mxu0 %v499_v1  ;;  %v490_v11 = vld [vmem:[%s3340_s0 + $0x8] sm:$0xff]  ;;  %v2563_v12 = vld [vmem:[%s3343_s3] ss:$0 sm:$0xff] }
  0x1b   : > { %2682 = vmatprep.subr.mxu0 %v498_v2  ;;  %v590_v14 = vld [vmem:[%s3344_s4] sm:$0xff] }
  0x1c   : > { %2683 = vmatpush3.msra.mxu0 %v498_v2 }
  0x1d   : > { %2684 = vmatprep.subr.mxu0 %v497_v4 }
  0x1e   : > { %2685 = vmatpush3.msra.mxu0 %v497_v4 }
  0x1f   : > { %2686 = vmatprep.subr.mxu0 %v496_v5 }
  0x20   : > { %2687 = vmatpush3.msra.mxu0 %v496_v5 }
  0x21   : > { %2688 = vmatprep.subr.mxu0 %v495_v6 }
  0x22   : > { %2689 = vmatpush3.msra.mxu0 %v495_v6 }
  0x23   : > { %2690 = vmatprep.subr.mxu0 %v494_v7 }
  0x24   : > { %2691 = vmatpush3.msra.mxu0 %v494_v7 }
  0x25   : > { %2692 = vmatprep.subr.mxu0 %v493_v8 }
  0x26   : > { %2693 = vmatpush3.msra.mxu0 %v493_v8 }
  0x27   : > { %2694 = vmatprep.subr.mxu0 %v492_v9 }
  0x28   : > { %2695 = vmatpush3.msra.mxu0 %v492_v9 }
  0x29   : > { %2696 = vmatprep.subr.mxu0 %v491_v10 }
  0x2a   : > { %2697 = vmatpush3.msra.mxu0 %v491_v10 }
  0x2b   : > { %2699 = vmatmul.mubr.msk.f32.vlgmr.msra.gmra.mxu0 %vm508_vm0, %v490_v11 }
  0xeb   : > { %v2700_v13 = vpop.f32.mrf.mxu0 }
  0xec   : > { %v587_v15 = vadd.f32 %v2700_v13, %v2563_v12 }
  0xed   : > { %v581_v16 = vpop.f32.mrf.mxu0 }
  0xee   : > { %v592_v17 = vadd.f32 %v590_v14, %v587_v15  ;;  %v582_v18 = vadd.f32 %v2563_v12, %v581_v16 }
  0xf0   : > { %595 = vst.msk [vmem:[#allocation2 + $0x8] sm:$0xff] %vm593_vm1, %v592_v17  ;;  %v591_v19 = vadd.f32 %v590_v14, %v582_v18 }
  0xf2   : > { %594 = vst.msk [vmem:[#allocation2] sm:$0xff] %vm593_vm1, %v591_v19 }
  0xf3 PF: > { %v602_v20 = vld [vmem:[%s3056_s23 + $0x18] sm:$0xff]  ;;  %v601_v21 = vld [vmem:[%s3056_s23 + $0x10] sm:$0xff]  ;;  %vm607_vm2 = vcmask 261120   ;;  %v600_v23 = vld [vmem:[%s3056_s23 + $0x8] sm:$0xff]  ;;  %v603_v26 = vlaneseq  ;;  %v2967_v32 = vmov 0.0   ;;  %s2969_s27 = smov 120  }
  0xf4   : > { %2701 = vmatprep.subr.mxu1 %v602_v20  ;;  %v599_v24 = vld [vmem:[%s3056_s23] sm:$0xff]  ;;  %2722 = vmatprep.subr.mxu0 %v2967_v32  ;;  %s2968_s23 = smov 104   ;;  %vm2970_vm3 = vmmov 0   ;;  %s2972_s19 = smov 96   ;;  %vm705_vm4 = vcmask 64512   ;;  %v1313_v3 = vld [vmem:[%s3341_s1 + $0x8] sm:$0xff] }
  0xf5   : > { %2702 = vmatpush3.msra.mxu1 %v602_v20  ;;  %v3134_v27 = vshrl.u32 %v603_v26, 7  ;;  %v3138_v29 = vld [vmem:[%s3076_s22] sm:$0xff]  ;;  %2724 = vmatprep.mubr.msk.f32.mxu0 %vm2970_vm3, %v2967_v32  ;;  %s2971_s22 = smov 112   ;;  %s2973_s20 = smov 64   ;;  %vm2044_vm5 = vcmask 130048   ;;  %vm2047_vm6 = vcmask 195584  }
  0xf6   : > { %2703 = vmatprep.subr.mxu1 %v601_v21  ;;  %v1312_v53 = vld [vmem:[%s3341_s1] sm:$0xff]  ;;  %s2974_s28 = smov 8   ;;  %s2975_s30 = smov 16   ;;  %vm2283_vm7 = vcmask 523264  }
  0xf7   : > { %2704 = vmatpush3.msra.mxu1 %v601_v21  ;;  %v3130_v25 = vld [vmem:[#allocation2 + $0x8] sm:$0xff]  ;;  %v605_v28 = vsub.s32 0, %v3134_v27  ;;  %s3352_s11 = sadd.s32 4294967295, %s2965_s15  }
  0xf8   : > { %2705 = vmatprep.subr.mxu1 %v600_v23  ;;  %p3313_p6 = scmp.eq.s32.totalorder %s3352_s11, 1 }
  0xf9   : > { %v3124_v22 = vld [vmem:[#allocation2] sm:$0xff]  ;;  %2706 = vmatpush3.msra.mxu1 %v600_v23  ;;  %v606_v31 = vrot.slane %v3138_v29, %v605_v28 }
  0xfa   : > { %2709 = vmatprep.mubr.msk.f32.mxu1 %vm607_vm2, %v3124_v22  ;;  %2707 = vmatprep.subr.mxu1 %v599_v24 }
  0xfb   : > { %2708 = vmatpush3.msra.mxu1 %v599_v24 }
  0xfc   : > { %2710 = vmatmul.mubr.msk.f32.vlgmr.msra.gmra.mxu1 %vm607_vm2, %v3130_v25  ;;  %2712 = vmatprep.subr.mxu1 %v2967_v32 }
  0xfd   : > { %2714 = vmatprep.mubr.msk.f32.mxu1 %vm2970_vm3, %v2967_v32 }
 0x1bc   : > { %v2711_v30 = vpop.f32.mrf.mxu1 }
 0x1bd   : > { %v686_v35 = vadd.f32 %v2711_v30, %v606_v31 }
 0x1be   : > { %v680_v33 = vpop.f32.mrf.mxu1 }
 0x1bf   : > { %v681_v34 = vadd.f32 %v680_v33, %v606_v31 }
 0x1c1   : > { %699 = vrot.lane.b32.xlu1 %v681_v34, %s2968_s23  ;;  %691 = vrot.lane.b32.xlu0 %v681_v34, %s2969_s27 }
 0x1c5   : > { %693 = vrot.lane.b32.xlu1 %v686_v35, %s2969_s27  ;;  %695 = vrot.lane.b32.xlu0 %v681_v34, %s2971_s22 }
 0x1c9   : > { %701 = vrot.lane.b32.xlu1 %v686_v35, %s2968_s23  ;;  %697 = vrot.lane.b32.xlu0 %v686_v35, %s2971_s22 }
 0x1cd   : > { %703 = vrot.lane.b32.xlu0 %v681_v34, %s2972_s19 }
 0x233   : > { %v700_v36 = vpop.permute.xlu1 %699  ;;  %v692_v37 = vpop.permute.xlu0 %691 }
 0x234   : > { %780 = vrot.lane.b32.xlu1 %v692_v37, %s2972_s19 }
 0x237   : > { %v696_v38 = vpop.permute.xlu0 %695  ;;  %v694_v39 = vpop.permute.xlu1 %693 }
 0x238   : > { %932 = vrot.lane.b32.xlu1 %v700_v36, %s2972_s19  ;;  %856 = vrot.lane.b32.xlu0 %v696_v38, %s2972_s19 }
 0x23b   : > { %v3147_v40 = vpop.permute.xlu0 %697  ;;  %v3149_v41 = vpop.permute.xlu1 %701 }
 0x23c   : > { %1084 = vrot.lane.b32.xlu1 %v694_v39, %s2972_s19  ;;  %1008 = vrot.lane.b32.xlu0 %v686_v35, %s2972_s19 }
 0x23f   : > { %v704_v42 = vpop.permute.xlu0 %703 }
 0x240   : > { %1236 = vrot.lane.b32.xlu1 %v3149_v41, %s2972_s19  ;;  %1160 = vrot.lane.b32.xlu0 %v3147_v40, %s2972_s19 }
 0x241   : > { %2713 = vmatpush3.xpose.msk.msra.mxu1 %vm705_vm4, %v704_v42 }
 0x242   : > { %2717 = vmatprep.subr.mxu1 %v2967_v32 }
 0x244   : > { %2715 = vmatmul.mubr.msk.f32.vlgmr.msra.gmra.mxu1 %vm705_vm4, %v681_v34  ;;  %1394 = vrot.lane.b32.xlu1 %v681_v34, %s2973_s20 }
 0x245   : > { %1698 = vrot.lane.b32.xlu0 %v686_v35, %s2973_s20  ;;  %2719 = vmatprep.mubr.msk.f32.mxu1 %vm2970_vm3, %v2967_v32 }
 0x248   : > { %1774 = vrot.lane.b32.xlu1 %v694_v39, %s2973_s20 }
 0x249   : > { %1470 = vrot.lane.b32.xlu0 %v692_v37, %s2973_s20 }
 0x24c   : > { %1546 = vrot.lane.b32.xlu1 %v696_v38, %s2973_s20 }
 0x250   : > { %1622 = vrot.lane.b32.xlu1 %v700_v36, %s2973_s20 }
 0x2a6   : > { %v781_v43 = vpop.permute.xlu1 %780 }
 0x2a7   : > { %2718 = vmatpush3.xpose.msk.msra.mxu1 %vm705_vm4, %v781_v43 }
 0x2a8   : > { %2727 = vmatprep.subr.mxu1 %v2967_v32 }
 0x2aa   : > { %v933_v44 = vpop.permute.xlu1 %932  ;;  %2720 = vmatmul.mubr.msk.f32.vlgmr.msra.gmra.mxu1 %vm705_vm4, %v692_v37  ;;  %v857_v45 = vpop.permute.xlu0 %856 }
 0x2ab   : > { %2723 = vmatpush3.xpose.msk.msra.mxu0 %vm705_vm4, %v857_v45  ;;  %2728 = vmatpush3.xpose.msk.msra.mxu1 %vm705_vm4, %v933_v44 }
 0x2ac   : > { %2729 = vmatprep.mubr.msk.f32.mxu1 %vm2970_vm3, %v2967_v32  ;;  %2732 = vmatprep.subr.mxu0 %v2967_v32 }
 0x2ad   : > { %2737 = vmatprep.subr.mxu1 %v2967_v32 }
 0x2ae   : > { %v1085_v46 = vpop.permute.xlu1 %1084  ;;  %2725 = vmatmul.mubr.msk.f32.vlgmr.msra.gmra.mxu0 %vm705_vm4, %v696_v38  ;;  %2730 = vmatmul.mubr.msk.f32.vlgmr.msra.gmra.mxu1 %vm705_vm4, %v700_v36  ;;  %v1009_v47 = vpop.permute.xlu0 %1008 }
 0x2af   : > { %2733 = vmatpush3.xpose.msk.msra.mxu0 %vm705_vm4, %v1009_v47  ;;  %2738 = vmatpush3.xpose.msk.msra.mxu1 %vm705_vm4, %v1085_v46 }
 0x2b0   : > { %2734 = vmatprep.mubr.msk.f32.mxu0 %vm2970_vm3, %v2967_v32  ;;  %2739 = vmatprep.mubr.msk.f32.mxu1 %vm2970_vm3, %v2967_v32 }
 0x2b1   : > { %2742 = vmatprep.subr.mxu0 %v2967_v32  ;;  %2747 = vmatprep.subr.mxu1 %v2967_v32 }
 0x2b2   : > { %v1237_v48 = vpop.permute.xlu1 %1236  ;;  %2735 = vmatmul.mubr.msk.f32.vlgmr.msra.gmra.mxu0 %vm705_vm4, %v686_v35  ;;  %2740 = vmatmul.mubr.msk.f32.vlgmr.msra.gmra.mxu1 %vm705_vm4, %v694_v39  ;;  %v1161_v49 = vpop.permute.xlu0 %1160 }
 0x2b3   : > { %2743 = vmatpush3.xpose.msk.msra.mxu0 %vm705_vm4, %v1161_v49  ;;  %2748 = vmatpush3.xpose.msk.msra.mxu1 %vm705_vm4, %v1237_v48 }
 0x2b4   : > { %2744 = vmatprep.mubr.msk.f32.mxu0 %vm2970_vm3, %v2967_v32  ;;  %2749 = vmatprep.mubr.msk.f32.mxu1 %vm2970_vm3, %v2967_v32 }
 0x2b5   : > { %2752 = vmatprep.subr.mxu0 %v2967_v32  ;;  %2757 = vmatprep.subr.mxu1 %v2967_v32 }
 0x2b6   : > { %v1395_v50 = vpop.permute.xlu1 %1394  ;;  %2745 = vmatmul.mubr.msk.f32.vlgmr.msra.gmra.mxu0 %vm705_vm4, %v3147_v40  ;;  %2750 = vmatmul.mubr.msk.f32.vlgmr.msra.gmra.mxu1 %vm705_vm4, %v3149_v41 }
 0x2b7   : > { %v3197_v51 = vpop.permute.xlu0 %1698  ;;  %2753 = vmatpush3.msra.mxu0 %v1395_v50  ;;  %2754 = vmatprep.mubr.msk.f32.mxu0 %vm2970_vm3, %v2967_v32 }
 0x2b8   : > { %2762 = vmatprep.subr.mxu0 %v2967_v32  ;;  %2759 = vmatprep.mubr.msk.f32.mxu1 %vm2970_vm3, %v2967_v32 }
 0x2ba   : > { %v1775_v30 = vpop.permute.xlu1 %1774 }
 0x2bb   : > { %v1471_v52 = vpop.permute.xlu0 %1470 }
 0x2bc   : > { %2758 = vmatpush3.msra.mxu1 %v1471_v52 }
 0x2bd   : > { %2767 = vmatprep.subr.mxu1 %v2967_v32 }
 0x2be   : > { %v1547_v33 = vpop.permute.xlu1 %1546 }
 0x2c2   : > { %v1623_v34 = vpop.permute.xlu1 %1622 }
 0x304   : > { %v776_v54 = vpop.f32.mrf.mxu1 }
 0x305   : > { %v1314_v55 = vadd.f32 %v1312_v53, %v776_v54 }
 0x306   : > { %v2716_v56 = vpop.f32.mrf.mxu1 }
 0x307   : > { %v1322_v57 = vsel %vm705_vm4, %v1314_v55, -inf }
 0x308   : > { %1323 = vmax.xlane.f32.xlu0 %v1322_v57 }
 0x36a   : > { %v852_v58 = vpop.f32.mrf.mxu1 }
 0x36b   : > { %v1315_v59 = vadd.f32 %v1312_v53, %v852_v58 }
 0x36c   : > { %v2721_v60 = vpop.f32.mrf.mxu1 }
 0x36d   : > { %v1325_v61 = vsel %vm705_vm4, %v1315_v59, -inf }
 0x36e   : > { %1326 = vmax.xlane.f32.xlu1 %v1325_v61  ;;  %v928_v62 = vpop.f32.mrf.mxu0  ;;  %v1004_v63 = vpop.f32.mrf.mxu1 }
 0x36f   : > { %v1316_v0 = vadd.f32 %v1312_v53, %v928_v62  ;;  %v1317_v4 = vadd.f32 %v1312_v53, %v1004_v63 }
 0x370   : > { %v2726_v1 = vpop.f32.mrf.mxu0  ;;  %v2731_v2 = vpop.f32.mrf.mxu1 }
 0x371   : > { %v1328_v5 = vsel %vm705_vm4, %v1316_v0, -inf  ;;  %v1331_v12 = vsel %vm705_vm4, %v1317_v4, -inf }
 0x372   : > { %v1156_v6 = vpop.f32.mrf.mxu1  ;;  %1329 = vmax.xlane.f32.xlu0 %v1328_v5  ;;  %v1080_v7 = vpop.f32.mrf.mxu0 }
 0x373   : > { %v1318_v8 = vadd.f32 %v1313_v3, %v1080_v7  ;;  %v1319_v11 = vadd.f32 %v1313_v3, %v1156_v6 }
 0x374   : > { %v2736_v9 = vpop.f32.mrf.mxu0  ;;  %v2741_v10 = vpop.f32.mrf.mxu1 }
 0x375   : > { %v1334_v13 = vsel %vm705_vm4, %v1318_v8, -inf  ;;  %v1337_v20 = vsel %vm705_vm4, %v1319_v11, -inf }
 0x376   : > { %v1308_v14 = vpop.f32.mrf.mxu1  ;;  %1332 = vmax.xlane.f32.xlu0 %v1331_v12  ;;  %1335 = vmax.xlane.f32.xlu1 %v1334_v13  ;;  %v1232_v15 = vpop.f32.mrf.mxu0 }
 0x377   : > { %v1320_v16 = vadd.f32 %v1313_v3, %v1232_v15  ;;  %v1321_v19 = vadd.f32 %v1313_v3, %v1308_v14 }
 0x378   : > { %v2746_v17 = vpop.f32.mrf.mxu0  ;;  %v2751_v18 = vpop.f32.mrf.mxu1 }
 0x379   : > { %v1340_v21 = vsel %vm705_vm4, %v1320_v16, -inf  ;;  %v1343_v23 = vsel %vm705_vm4, %v1321_v19, -inf }
 0x37a   : > { %1338 = vmax.xlane.f32.xlu0 %v1337_v20  ;;  %1341 = vmax.xlane.f32.xlu1 %v1340_v21  ;;  %v2052_v21 = vld [vmem:[%s3061_s26 + $0x10] sm:$0xff] }
 0x37e   : > { %1344 = vmax.xlane.f32.xlu0 %v1343_v23  ;;  %v2051_v23 = vld [vmem:[%s3061_s26 + $0x8] sm:$0xff] }
 0x38b   : > { %1926 = vrot.lane.b32.xlu1 %v3149_v41, %s2973_s20 }
 0x391   : > { %v1324_v24 = vpop.xlane.xlu0 %1323 }
 0x392   : > { %v1346_v26 = vsub.f32 %v1314_v55, %v1324_v24 }
 0x394   : > { %v1354_v28 = vmul.f32 1.442695, %v1346_v26  ;;  %1850 = vrot.lane.b32.xlu0 %v3147_v40, %s2973_s20 }
 0x396   : > { %2875 = vpow2.f32 %v1354_v28 }
 0x3a3   : > { %v3223_v31 = vpop.eup %2875 }
 0x3a4   : > { %2755 = vmatmul.mubr.msk.f32.vlgmr.msra.gmra.mxu0 %vm705_vm4, %v3223_v31  ;;  %v1370_v6 = vsel %vm705_vm4, %v3223_v31, 0.0  ;;  %v2050_v31 = vld [vmem:[%s3061_s26] sm:$0xff] }
 0x3a5   : > { %2763 = vmatpush3.msra.mxu0 %v1547_v33  ;;  %2764 = vmatprep.mubr.msk.f32.mxu0 %vm2970_vm3, %v2967_v32 }
 0x3a6   : > { %2772 = vmatprep.subr.mxu0 %v2967_v32 }
 0x3f7   : > { %v1327_v35 = vpop.xlane.xlu1 %1326 }
 0x3f8   : > { %v1347_v36 = vsub.f32 %v1315_v59, %v1327_v35 }
 0x3fa   : > { %v1356_v37 = vmul.f32 1.442695, %v1347_v36 }
 0x3fb   : > { %v1330_v38 = vpop.xlane.xlu0 %1329 }
 0x3fc   : > { %2877 = vpow2.f32 %v1356_v37  ;;  %v1348_v39 = vsub.f32 %v1316_v0, %v1330_v38 }
 0x3fe   : > { %v1358_v40 = vmul.f32 1.442695, %v1348_v39 }
 0x3ff   : > { %v1336_v41 = vpop.xlane.xlu1 %1335  ;;  %v1333_v42 = vpop.xlane.xlu0 %1332 }
 0x400   : > { %2879 = vpow2.f32 %v1358_v40  ;;  %v1350_v43 = vsub.f32 %v1318_v8, %v1336_v41  ;;  %v1349_v44 = vsub.f32 %v1317_v4, %v1333_v42 }
 0x402   : > { %v1362_v45 = vmul.f32 1.442695, %v1350_v43  ;;  %v1360_v46 = vmul.f32 1.442695, %v1349_v44 }
 0x403   : > { %v1342_v47 = vpop.xlane.xlu1 %1341  ;;  %v1339_v48 = vpop.xlane.xlu0 %1338 }
 0x404   : > { %2881 = vpow2.f32 %v1362_v45  ;;  %v1352_v49 = vsub.f32 %v1320_v16, %v1342_v47  ;;  %v1351_v50 = vsub.f32 %v1319_v11, %v1339_v48 }
 0x405   : > { %2883 = vpow2.f32 %v1360_v46 }
 0x406   : > { %v1366_v52 = vmul.f32 1.442695, %v1352_v49  ;;  %v1364_v53 = vmul.f32 1.442695, %v1351_v50 }
 0x407   : > { %v1345_v54 = vpop.xlane.xlu0 %1344  ;;  %v1927_v3 = vpop.permute.xlu1 %1926 }
 0x408   : > { %2885 = vpow2.f32 %v1366_v52  ;;  %v1353_v55 = vsub.f32 %v1321_v19, %v1345_v54 }
 0x409   : > { %v2878_v56 = vpop.eup %2877  ;;  %2887 = vpow2.f32 %v1364_v53 }
 0x40a   : > { %v1368_v57 = vmul.f32 1.442695, %v1353_v55  ;;  %2760 = vmatmul.mubr.msk.f32.vlgmr.msra.gmra.mxu1 %vm705_vm4, %v2878_v56  ;;  %v1373_v58 = vsel %vm705_vm4, %v2878_v56, 0.0 }
 0x40b   : > { %2768 = vmatpush3.msra.mxu1 %v1623_v34  ;;  %1374 = vadd.xlane.f32.xlu0 %v1373_v58  ;;  %v1851_v63 = vpop.permute.xlu0 %1850 }
 0x40c   : > { %2889 = vpow2.f32 %v1368_v57  ;;  %2769 = vmatprep.mubr.msk.f32.mxu1 %vm2970_vm3, %v2967_v32  ;;  %2777 = vmatprep.subr.mxu1 %v2967_v32 }
 0x40d   : > { %v2880_v59 = vpop.eup %2879 }
 0x40e   : > { %2765 = vmatmul.mubr.msk.f32.vlgmr.msra.gmra.mxu0 %vm705_vm4, %v2880_v59  ;;  %v1376_v60 = vsel %vm705_vm4, %v2880_v59, 0.0 }
 0x40f   : > { %2773 = vmatpush3.msra.mxu0 %v3197_v51  ;;  %1377 = vadd.xlane.f32.xlu1 %v1376_v60 }
 0x410   : > { %2774 = vmatprep.mubr.msk.f32.mxu0 %vm2970_vm3, %v2967_v32  ;;  %2782 = vmatprep.subr.mxu0 %v2967_v32 }
 0x411   : > { %v2882_v61 = vpop.eup %2881 }
 0x412   : > { %v2884_v62 = vpop.eup %2883  ;;  %2775 = vmatmul.mubr.msk.f32.vlgmr.msra.gmra.mxu0 %vm705_vm4, %v2882_v61  ;;  %v1382_v8 = vsel %vm705_vm4, %v2882_v61, 0.0 }
 0x413   : > { %2770 = vmatmul.mubr.msk.f32.vlgmr.msra.gmra.mxu1 %vm705_vm4, %v2884_v62  ;;  %2783 = vmatpush3.msra.mxu0 %v1851_v63  ;;  %v1379_v0 = vsel %vm705_vm4, %v2884_v62, 0.0 }
 0x414   : > { %2778 = vmatpush3.msra.mxu1 %v1775_v30  ;;  %1380 = vadd.xlane.f32.xlu0 %v1379_v0 }
 0x415   : > { %v2886_v1 = vpop.eup %2885  ;;  %2779 = vmatprep.mubr.msk.f32.mxu1 %vm2970_vm3, %v2967_v32  ;;  %2784 = vmatprep.mubr.msk.f32.mxu0 %vm2970_vm3, %v2967_v32 }
 0x416   : > { %v2888_v51 = vpop.eup %2887  ;;  %2787 = vmatprep.subr.mxu1 %v2967_v32  ;;  %2785 = vmatmul.mubr.msk.f32.vlgmr.msra.gmra.mxu0 %vm705_vm4, %v2886_v1  ;;  %v1388_v2 = vsel %vm705_vm4, %v2886_v1, 0.0 }
 0x417   : > { %2780 = vmatmul.mubr.msk.f32.vlgmr.msra.gmra.mxu1 %vm705_vm4, %v2888_v51  ;;  %1389 = vadd.xlane.f32.xlu1 %v1388_v2  ;;  %v1385_v4 = vsel %vm705_vm4, %v2888_v51, 0.0 }
 0x418   : > { %2788 = vmatpush3.msra.mxu1 %v1927_v3  ;;  %1386 = vadd.xlane.f32.xlu0 %v1385_v4 }
 0x419   : > { %v2890_v5 = vpop.eup %2889  ;;  %2789 = vmatprep.mubr.msk.f32.mxu1 %vm2970_vm3, %v2967_v32  ;;  %v2053_v32 = vld [vmem:[%s3061_s26 + $0x18] sm:$0xff]  ;;  %s2976_s26 = smov 24  }
 0x41a   : > { %v1391_v7 = vsel %vm705_vm4, %v2890_v5, 0.0  ;;  %2792 = vmatprep.subr.mxu0 %v2053_v32 }
 0x41b   : > { %2790 = vmatmul.mubr.msk.f32.vlgmr.msra.gmra.mxu1 %vm705_vm4, %v2890_v5  ;;  %1371 = vadd.xlane.f32.xlu1 %v1370_v6  ;;  %v2056_v5 = vsub.s32 1, %v3134_v27 }
 0x41c   : > { %1392 = vadd.xlane.f32.xlu0 %v1391_v7  ;;  %2793 = vmatpush3.msra.mxu0 %v2053_v32 }
 0x41d   : > { %2794 = vmatprep.subr.mxu0 %v2052_v21  ;;  %v2057_v6 = vrot.slane %v3138_v29, %v2056_v5 }
 0x41e   : > { %2795 = vmatpush3.msra.mxu0 %v2052_v21 }
 0x41f   : > { %2796 = vmatprep.subr.mxu0 %v2051_v23 }
 0x420   : > { %1383 = vadd.xlane.f32.xlu0 %v1382_v8  ;;  %2797 = vmatpush3.msra.mxu0 %v2051_v23  ;;  %v2183_v23 = vld [vmem:[%s3066_s29 + $0x18] sm:$0xff] }
 0x421   : > { %2798 = vmatprep.subr.mxu0 %v2050_v31  ;;  %2803 = vmatprep.subr.mxu1 %v2183_v23 }
 0x422   : > { %2799 = vmatpush3.msra.mxu0 %v2050_v31  ;;  %2804 = vmatpush3.msra.mxu1 %v2183_v23  ;;  %v2277_v31 = vld [vmem:[%s3071_s12 + $0x30] sm:$0xff] }
 0x464   : > { %v3260_v9 = vpop.f32.mrf.mxu0 }
 0x466   : > { %v2756_v10 = vpop.f32.mrf.mxu0 }
 0x494   : > { %v1375_v11 = vpop.xlane.xlu0 %1374 }
 0x495   : > { %2891 = vrcp.f32 %v1375_v11 }
 0x498   : > { %v1378_v12 = vpop.xlane.xlu1 %1377 }
 0x499   : > { %2893 = vrcp.f32 %v1378_v12 }
 0x49d   : > { %v1381_v13 = vpop.xlane.xlu0 %1380 }
 0x4a0   : > { %v1390_v15 = vpop.xlane.xlu1 %1389 }
 0x4a1   : > { %v1387_v14 = vpop.xlane.xlu0 %1386  ;;  %2895 = vrcp.f32 %v1390_v15 }
 0x4a2   : > { %v2892_v16 = vpop.eup %2891  ;;  %2897 = vrcp.f32 %v1387_v14 }
 0x4a3   : > { %2899 = vrcp.f32 %v1381_v13 }
 0x4a4   : > { %v1372_v52 = vpop.xlane.xlu1 %1371 }
 0x4a5   : > { %v1393_v18 = vpop.xlane.xlu0 %1392 }
 0x4a6   : > { %v2894_v24 = vpop.eup %2893  ;;  %2901 = vrcp.f32 %v1393_v18 }
 0x4a7   : > { %2903 = vrcp.f32 %v1372_v52 }
 0x4a9   : > { %v1384_v53 = vpop.xlane.xlu0 %1383 }
 0x4aa   : > { %2905 = vrcp.f32 %v1384_v53 }
 0x4ae   : > { %v2896_v37 = vpop.eup %2895 }
 0x4af   : > { %v2898_v39 = vpop.eup %2897 }
 0x4b0   : > { %v2900_v45 = vpop.eup %2899 }
 0x4b3   : > { %v2902_v46 = vpop.eup %2901 }
 0x4b4   : > { %v2904_v56 = vpop.eup %2903 }
 0x4b5   : > { %v2010_v61 = vmul.f32 %v2904_v56, %v3260_v9  ;;  %v2272_v56 = vld [vmem:[%s3071_s12 + $0x8] sm:$0xff] }
 0x4b7   : > { %v2906_v57 = vpop.eup %2905 }
 0x4ca   : > { %v1542_v17 = vpop.f32.mrf.mxu1 }
 0x4cb   : > { %v2011_v19 = vmul.f32 %v2892_v16, %v1542_v17 }
 0x4cc   : > { %v2761_v20 = vpop.f32.mrf.mxu1 }
 0x4cd   : > { %2020 = vrot.lane.b32.xlu1 %v2011_v19, %s2974_s28 }
 0x4ce   : > { %v1618_v26 = vpop.f32.mrf.mxu0 }
 0x4cf   : > { %v2012_v28 = vmul.f32 %v2894_v24, %v1618_v26  ;;  %v2182_v24 = vld [vmem:[%s3066_s29 + $0x10] sm:$0xff]  ;;  %v2181_v26 = vld [vmem:[%s3066_s29 + $0x8] sm:$0xff] }
 0x4d0   : > { %v2766_v30 = vpop.f32.mrf.mxu0  ;;  %2805 = vmatprep.subr.mxu1 %v2182_v24 }
 0x4d1   : > { %2028 = vrot.lane.b32.xlu1 %v2012_v28, %s2975_s30  ;;  %2806 = vmatpush3.msra.mxu1 %v2182_v24  ;;  %v2180_v28 = vld [vmem:[%s3066_s29] sm:$0xff]  ;;  %v2278_v30 = vld [vmem:[%s3071_s12 + $0x38] sm:$0xff]  ;;  %s2977_s29 = smov [#allocation2]  }
 0x4d2   : > { %v1770_v33 = vpop.f32.mrf.mxu0  ;;  %2807 = vmatprep.subr.mxu1 %v2181_v26  ;;  %2814 = vmatprep.subr.mxu0 %v2278_v30 }
 0x4d3   : > { %v1694_v34 = vpop.f32.mrf.mxu1  ;;  %v2014_v58 = vmul.f32 %v2906_v57, %v1770_v33  ;;  %2808 = vmatpush3.msra.mxu1 %v2181_v26  ;;  %v2276_v33 = vld [vmem:[%s3071_s12 + $0x28] sm:$0xff]  ;;  %v2271_v57 = vld [vmem:[%s3071_s12] sm:$0xff]  ;;  %v2395_v26 = vsub.s32 6, %v3134_v27 }
 0x4d4   : > { %v2776_v35 = vpop.f32.mrf.mxu0  ;;  %v2013_v48 = vmul.f32 %v2900_v45, %v1694_v34  ;;  %2809 = vmatprep.subr.mxu1 %v2180_v28  ;;  %v2275_v34 = vld [vmem:[%s3071_s12 + $0x20] sm:$0xff] }
 0x4d5   : > { %v2771_v36 = vpop.f32.mrf.mxu1  ;;  %2810 = vmatpush3.msra.mxu1 %v2180_v28  ;;  %v2401_v28 = vsub.s32 7, %v3134_v27 }
 0x4d6   : > { %v1922_v38 = vpop.f32.mrf.mxu0 }
 0x4d7   : > { %v1846_v40 = vpop.f32.mrf.mxu1  ;;  %v2016_v41 = vmul.f32 %v2896_v37, %v1922_v38 }
 0x4d8   : > { %v2015_v42 = vmul.f32 %v2898_v39, %v1846_v40  ;;  %v2786_v43 = vpop.f32.mrf.mxu0 }
 0x4d9   : > { %v2781_v44 = vpop.f32.mrf.mxu1  ;;  %2030 = vrot.lane.b32.xlu1 %v2016_v41, %s2975_s30  ;;  %v2170_v41 = vsub.s32 2, %v3134_v27 }
 0x4da   : > { %2022 = vrot.lane.b32.xlu0 %v2015_v42, %s2974_s28  ;;  %v2176_v42 = vsub.s32 3, %v3134_v27 }
 0x4db   : > { %v1998_v47 = vpop.f32.mrf.mxu1  ;;  %v2171_v43 = vrot.slane %v3138_v29, %v2170_v41 }
 0x4dc   : > { %v2017_v49 = vmul.f32 %v2902_v46, %v1998_v47  ;;  %v2177_v46 = vrot.slane %v3138_v29, %v2176_v42 }
 0x4dd   : > { %v2791_v50 = vpop.f32.mrf.mxu1 }
 0x4de   : > { %2036 = vrot.lane.b32.xlu0 %v2013_v48, %s2976_s26  ;;  %2038 = vrot.lane.b32.xlu1 %v2017_v49, %s2976_s26 }
 0x53f   : > { %v2021_v54 = vpop.permute.xlu1 %2020 }
 0x540   : > { %v2042_v63 = vsel %vm705_vm4, %v2010_v61, %v2021_v54  ;;  %v2274_v54 = vld [vmem:[%s3071_s12 + $0x18] sm:$0xff] }
 0x543   : > { %v2029_v55 = vpop.permute.xlu1 %2028 }
 0x544   : > { %v2045_v0 = vsel %vm2044_vm5, %v2042_v63, %v2029_v55  ;;  %v2273_v55 = vld [vmem:[%s3071_s12 + $0x10] sm:$0xff]  ;;  %s2416_s12 = sshll.u32 %s2977_s29, 4  ;;  %s2417_s12 = int_to_ptr.vmem [resolvable:$true] %s2416_s12 }
 0x545   : > { %s2915_s24 = scalar_lea.vmem %s2417_s12, 256  ;;  %p2922_p10 = scmp.lt.s32.totalorder %s2417_s12, %s2417_s12 }
 0x546   : > { %p2916_p7 = scmp.ne.s32.totalorder %s2417_s12, %s2915_s24  ;;  %p2923_p11 = scmp.lt.s32.totalorder %s2915_s24, %s2915_s24 }
 0x548   : > { %p2917_p8 = pnand %p2916_p7, %p3313_p6  ;;  %p2924_p12 = por %p2923_p11, %p2922_p10 }
 0x54a   : > { %p2918_p9 = pneg %p2917_p8 }
 0x54b   : > { %v2031_v59 = vpop.permute.xlu1 %2030 }
 0x54c   : > { %v2023_v60 = vpop.permute.xlu0 %2022  ;;  %p2925_p13 = pnand %p2924_p12, %p2918_p9 }
 0x54d   : > { %v2043_v62 = vsel %vm705_vm4, %v2014_v58, %v2023_v60  ;;  %v2186_v58 = vsub.s32 4, %v3134_v27 }
 0x54e   : > { %v2046_v51 = vsel %vm2044_vm5, %v2043_v62, %v2031_v59 }
 0x54f   : > { %v2187_v59 = vrot.slane %v3138_v29, %v2186_v58 }
 0x550   : > { %v2039_v1 = vpop.permute.xlu1 %2038  ;;  %v2037_v2 = vpop.permute.xlu0 %2036 }
 0x551   : > { %v2049_v3 = vsel %vm2047_vm6, %v2046_v51, %v2039_v1  ;;  %v2048_v4 = vsel %vm2047_vm6, %v2045_v0, %v2037_v2  ;;  %v2281_v51 = vsub.s32 5, %v3134_v27 }
 0x552   : > { %2800 = vmatprep.mubr.msk.f32.mxu0 %vm607_vm2, %v2048_v4 }
 0x553   : > { %2801 = vmatmul.mubr.msk.f32.vlgmr.msra.gmra.mxu0 %vm607_vm2, %v2049_v3  ;;  %v2282_v2 = vrot.slane %v3138_v29, %v2281_v51 }
 0x554   : > { %2815 = vmatpush3.msra.mxu0 %v2278_v30  ;;  %v2396_v30 = vrot.slane %v3138_v29, %v2395_v26 }
 0x555   : > { %2816 = vmatprep.subr.mxu0 %v2277_v31 }
 0x556   : > { %2817 = vmatpush3.msra.mxu0 %v2277_v31 }
 0x557   : > { %2818 = vmatprep.subr.mxu0 %v2276_v33 }
 0x558   : > { %2819 = vmatpush3.msra.mxu0 %v2276_v33 }
 0x559   : > { %2820 = vmatprep.subr.mxu0 %v2275_v34 }
 0x55a   : > { %2821 = vmatpush3.msra.mxu0 %v2275_v34  ;;  %v2402_v34 = vrot.slane %v3138_v29, %v2401_v28 }
 0x55b   : > { %2822 = vmatprep.subr.mxu0 %v2274_v54 }
 0x55c   : > { %2823 = vmatpush3.msra.mxu0 %v2274_v54 }
 0x55d   : > { %2824 = vmatprep.subr.mxu0 %v2273_v55 }
 0x55e   : > { %2825 = vmatpush3.msra.mxu0 %v2273_v55 }
 0x55f   : > { %2826 = vmatprep.subr.mxu0 %v2272_v56 }
 0x560   : > { %2827 = vmatpush3.msra.mxu0 %v2272_v56 }
 0x561   : > { %2828 = vmatprep.subr.mxu0 %v2271_v57 }
 0x562   : > { %2829 = vmatpush3.msra.mxu0 %v2271_v57 }
 0x613   : > { %v2802_v7 = vpop.f32.mrf.mxu0 }
 0x614   : > { %v2136_v8 = vadd.f32 %v2802_v7, %v2057_v6 }
 0x615   : > { %v2130_v9 = vpop.f32.mrf.mxu0 }
 0x616   : > { %v2131_v10 = vadd.f32 %v2130_v9, %v2057_v6  ;;  %v2140_v11 = vadd.f32 %v2136_v8, %v3130_v25 }
 0x618   : > { %v2144_v12 = vsel %vm607_vm2, %v2140_v11, 0.0  ;;  %v2139_v13 = vadd.f32 %v2131_v10, %v3124_v22 }
 0x619   : > { %2145 = vadd.xlane.f32.xlu1 %v2144_v12 }
 0x61a   : > { %v2141_v32 = vsel %vm607_vm2, %v2139_v13, 0.0 }
 0x61b   : > { %2142 = vadd.xlane.f32.xlu0 %v2141_v32 }
 0x6a2   : > { %v2146_v14 = vpop.xlane.xlu1 %2145 }
 0x6a3   : > { %v2149_v15 = vmul.f32 0.03125, %v2146_v14 }
 0x6a4   : > { %v2143_v16 = vpop.xlane.xlu0 %2142 }
 0x6a5   : > { %v2148_v17 = vmul.f32 0.03125, %v2143_v16  ;;  %v2151_v18 = vsub.f32 %v2140_v11, %v2149_v15 }
 0x6a7   : > { %v2150_v19 = vsub.f32 %v2139_v13, %v2148_v17  ;;  %v2153_v21 = vmul.f32 %v2151_v18, %v2151_v18 }
 0x6a9   : > { %v2152_v20 = vmul.f32 %v2150_v19, %v2150_v19  ;;  %v2157_v22 = vsel %vm607_vm2, %v2153_v21, 0.0 }
 0x6ab   : > { %v2154_v25 = vsel %vm607_vm2, %v2152_v20, 0.0 }
 0x6ac   : > { %2155 = vadd.xlane.f32.xlu0 %v2154_v25 }
 0x6b0   : > { %2158 = vadd.xlane.f32.xlu0 %v2157_v22 }
 0x735   : > { %v2156_v35 = vpop.xlane.xlu0 %2155 }
 0x736   : > { %v2160_v36 = vmul.f32 0.03125, %v2156_v35 }
 0x738   : > { %v2162_v37 = vadd.f32 1e-05, %v2160_v36 }
 0x739   : > { %v2159_v38 = vpop.xlane.xlu0 %2158 }
 0x73a   : > { %2907 = vrsqrt.f32 %v2162_v37  ;;  %v2161_v39 = vmul.f32 0.03125, %v2159_v38 }
 0x73c   : > { %v2163_v40 = vadd.f32 1e-05, %v2161_v39 }
 0x73e   : > { %2909 = vrsqrt.f32 %v2163_v40 }
 0x747   : > { %v2908_v44 = vpop.eup %2907 }
 0x748   : > { %v2166_v45 = vmul.f32 %v2908_v44, %v2150_v19 }
 0x74a   : > { %v2172_v47 = vmul.f32 %v2171_v43, %v2166_v45 }
 0x74b   : > { %v2910_v48 = vpop.eup %2909 }
 0x74c   : > { %v2167_v49 = vmul.f32 %v2910_v48, %v2151_v18  ;;  %v2178_v50 = vadd.f32 %v2177_v46, %v2172_v47 }
 0x74e   : > { %v2173_v52 = vmul.f32 %v2171_v43, %v2167_v49  ;;  %2811 = vmatprep.mubr.msk.f32.mxu1 %vm607_vm2, %v2178_v50 }
 0x750   : > { %v2179_v53 = vadd.f32 %v2177_v46, %v2173_v52 }
 0x752   : > { %2812 = vmatmul.mubr.msk.f32.vlgmr.msra.gmra.mxu1 %vm607_vm2, %v2179_v53 }
 0x812   : > { %v2813_v60 = vpop.f32.mrf.mxu1 }
 0x813   : > { %v2266_v61 = vadd.f32 %v2813_v60, %v2187_v59 }
 0x814   : > { %v2260_v62 = vpop.f32.mrf.mxu1 }
 0x815   : > { %v2261_v63 = vadd.f32 %v2260_v62, %v2187_v59  ;;  %v2270_v1 = vmax.f32 %v2266_v61, 0.0 }
 0x817   : > { %v2269_v0 = vmax.f32 %v2261_v63, 0.0 }
 0x819   : > { %2830 = vmatprep.mubr.msk.f32.mxu0 %vm2283_vm7, %v2269_v0 }
 0x81a   : > { %2831 = vmatmul.mubr.msk.f32.vlgmr.msra.gmra.mxu0 %vm2283_vm7, %v2270_v1 }
 0x8da   : > { %v2832_v3 = vpop.f32.mrf.mxu0 }
 0x8db   : > { %v2362_v4 = vadd.f32 %v2832_v3, %v2282_v2 }
 0x8dc   : > { %v2356_v5 = vpop.f32.mrf.mxu0 }
 0x8dd   : > { %v2357_v6 = vadd.f32 %v2356_v5, %v2282_v2  ;;  %v2366_v7 = vadd.f32 %v2362_v4, %v2179_v53 }
 0x8df   : > { %v2370_v8 = vsel %vm607_vm2, %v2366_v7, 0.0  ;;  %v2365_v9 = vadd.f32 %v2357_v6, %v2178_v50 }
 0x8e0   : > { %2371 = vadd.xlane.f32.xlu0 %v2370_v8 }
 0x8e1   : > { %v2367_v10 = vsel %vm607_vm2, %v2365_v9, 0.0 }
 0x8e2   : > { %2368 = vadd.xlane.f32.xlu1 %v2367_v10 }
 0x969   : > { %v2372_v11 = vpop.xlane.xlu0 %2371 }
 0x96a   : > { %v2374_v12 = vmul.f32 0.03125, %v2372_v11 }
 0x96b   : > { %v2369_v13 = vpop.xlane.xlu1 %2368 }
 0x96c   : > { %v2376_v32 = vsub.f32 %v2366_v7, %v2374_v12  ;;  %v2373_v14 = vmul.f32 0.03125, %v2369_v13 }
 0x96e   : > { %v2375_v15 = vsub.f32 %v2365_v9, %v2373_v14  ;;  %v2378_v16 = vmul.f32 %v2376_v32, %v2376_v32 }
 0x970   : > { %v2382_v17 = vsel %vm607_vm2, %v2378_v16, 0.0  ;;  %v2377_v18 = vmul.f32 %v2375_v15, %v2375_v15 }
 0x971   : > { %2383 = vadd.xlane.f32.xlu0 %v2382_v17 }
 0x972   : > { %v2379_v19 = vsel %vm607_vm2, %v2377_v18, 0.0 }
 0x973   : > { %2380 = vadd.xlane.f32.xlu1 %v2379_v19 }
 0x9fa   : > { %v2384_v20 = vpop.xlane.xlu0 %2383 }
 0x9fb   : > { %v2386_v25 = vmul.f32 0.03125, %v2384_v20 }
 0x9fc   : > { %v2381_v21 = vpop.xlane.xlu1 %2380 }
 0x9fd   : > { %v2388_v22 = vadd.f32 1e-05, %v2386_v25  ;;  %v2385_v23 = vmul.f32 0.03125, %v2381_v21 }
 0x9ff   : > { %2911 = vrsqrt.f32 %v2388_v22  ;;  %v2387_v24 = vadd.f32 1e-05, %v2385_v23 }
 0xa01   : > { %2913 = vrsqrt.f32 %v2387_v24 }
 0xa0c   : > { %v2912_v31 = vpop.eup %2911 }
 0xa0d   : > { %v2392_v33 = vmul.f32 %v2912_v31, %v2376_v32 }
 0xa0e   : > { %v2914_v35 = vpop.eup %2913 }
 0xa0f   : > { %v2391_v36 = vmul.f32 %v2914_v35, %v2375_v15  ;;  %v2398_v37 = vmul.f32 %v2396_v30, %v2392_v33 }
 0xa11   : > { %v2397_v38 = vmul.f32 %v2396_v30, %v2391_v36  ;;  %v2404_v39 = vadd.f32 %v2402_v34, %v2398_v37 }
 0xa13   : > { %v2403_v27 = vadd.f32 %v2402_v34, %v2397_v38  ;;  %2406 = vst.msk [vmem:[#allocation2 + $0x8] sm:$0xff] %vm607_vm2, %v2404_v39 }
 0xa15   : > { %2405 = vst.msk [vmem:[#allocation2] sm:$0xff] %vm607_vm2, %v2403_v27 }
 0xa16   : > { %2928 = shalt.err (!%p2925_p13)
}
 0xa17   : > { %s2978_s25 = smov 128  }
 0xa18   : > { %2834 = dma.vmem_to_hbm [thread:$0]  (%p3313_p6), %s2417_s12, 256, %s3350_s10, [#allocation3], %s2978_s25, %s2978_s25, %s2974_s28  }
 0xa19   : > { %2952 = dma.done.wait (%p3313_p6), [#allocation3], 256  }
 0xa1a   : > { %2954 = vsyncadd (%p3313_p6), [#allocation3], 4294967040 }
 0xa1b PF: > { %s21_s15 = sadd.s32 1, %s2965_s15   ;;  %s3354_s22 = sld [smem:[#allocation5_spill]] }
 0xa1c   : > { %p18_p0 = scmp.ge.s32.totalorder %s21_s15, 4   ;;  %s3355_s13 = smov %s2961_s14 }
 0xa1e   :  { %20 = sbr.rel (!%p18_p0) target bundleno = 2 (0x2), region = 110 }
 0xa21   : > { %s3356_s14 = smov %s3354_s22 }
 0xa23   :  { %2432 = vsyncpa [#allocation3], 1 }
 0xa24   :  { %2434 = vsyncpa [#allocation3 + $0x1], 1 }

</bundles_post_ra>
